<compile_context>
chip_gen: v5e
topology: v5e:2x2
jax: 0.10.0
libtpu: 0.0.40
codegen_flags: <defaults>
</compile_context>

<pallas_src>
import numpy as np
import jax
import jax.numpy as jnp
from jax.experimental import pallas as pl
from jax.experimental.pallas import tpu as pltpu

# ---------------- configuration (opt) ----------------
BATCH = 8
FIELD_NUM = 8                     # opt['field_num']
LATENT_DIM = 16                   # opt['latent_dim']
DNN_DIM = FIELD_NUM * LATENT_DIM  # 128
HIDDEN = 32                       # opt['mlp_dims'] = (32, 32)
CROSS_NUM = 2                     # opt['cross']
FEATURE_NUM = 64                  # opt['feat_num']
SCALING = 2.0                     # opt['scaling']
TEMP = 1.0                        # self.temp
N_DOMAINS = 3
HEAD_W = FIELD_NUM + LATENT_DIM   # 24 (fmask + emask per domain)
HEADS_PAD = 128                   # 3*24 = 72 real head columns, padded lane-dense
BLK_DIM = N_DOMAINS * DNN_DIM     # 384: [domain1 | domain2 | domain3] block layout
HPAD = 128                        # 3*32 = 96 real tower-hidden columns, padded
OUT_PAD = 128                     # logits live in lanes 0..2 of a lane-dense output


# ---------------- the single fused kernel ----------------
def _fused_kernel(x_idx_ref, table_ref,
                  wh1_ref, bh1_ref, wh2_ref, bh2_ref,
                  w_heads_ref, b_heads_ref, ef_ref, ee_ref,
                  cw_ref, cb_ref, w1_ref, b1_ref, w2_ref, b2_ref,
                  cc_ref, cd_ref, logits_ref):
    f32 = jnp.float32

    # ---- embedding gather: one-hot over the flattened (field, feature) axis ----
    idx = x_idx_ref[...]                                             # (B, F) int32
    lane = jax.lax.broadcasted_iota(jnp.int32,
                                    (BATCH, FIELD_NUM * FEATURE_NUM), 1)
    onehot = jnp.zeros((BATCH, FIELD_NUM * FEATURE_NUM), f32)
    for f in range(FIELD_NUM):                                       # 8 VPU compares
        onehot = onehot + (lane == (idx[:, f:f + 1] + f * FEATURE_NUM)).astype(f32)
    # one MXU dot replaces the per-field gather loop + concat
    x_dnn = jnp.dot(onehot, table_ref[...], preferred_element_type=f32)   # (B, D)

    # ---- domain hypernet: MLP(D -> H -> H), ReLU, dropout=identity, no BN ----
    h = jnp.maximum(
        jnp.dot(x_dnn, wh1_ref[...], preferred_element_type=f32) + bh1_ref[...], 0.0)
    h = jnp.maximum(
        jnp.dot(h, wh2_ref[...], preferred_element_type=f32) + bh2_ref[...], 0.0)

    # ---- all six mask heads in ONE lane-dense dot: (B,32)@(32,128) ----
    # columns [k*24 : k*24+24] = [fmask_k(8) | emask_k(16)], rest zero-padded.
    heads = jax.nn.sigmoid(
        TEMP * (jnp.dot(h, w_heads_ref[...], preferred_element_type=f32)
                + b_heads_ref[...]))                                 # (B, 128)

    # ---- expand masks to the (B, 3*D) domain-block layout (two 0/1 MXU dots) ----
    mask = (jnp.dot(heads, ef_ref[...], preferred_element_type=f32) *
            jnp.dot(heads, ee_ref[...], preferred_element_type=f32))     # (B, 3*D)
    x_rep = jnp.concatenate([x_dnn, x_dnn, x_dnn], axis=1)               # (B, 3*D)
    x_blk = x_rep * (SCALING * mask)                                     # masked embeds

    # ---- CrossNetwork, all three domains per layer in ONE block-diagonal dot ----
    # cw_exp[i] block (k,k) holds cross weight w_{k,i} repeated across columns, so
    # the dot directly yields x0 * (x . w) broadcast over the domain's 128 lanes.
    x0 = x_blk
    xc = x_blk
    for i in range(CROSS_NUM):
        xw = jnp.dot(xc, cw_ref[i], preferred_element_type=f32)          # (B, 3*D)
        xc = x0 * xw + cb_ref[i] + xc

    # ---- DNN towers (eval: dropout identity, use_bn=False), block-diagonal ----
    hh = jnp.maximum(
        jnp.dot(x_blk, w1_ref[...], preferred_element_type=f32) + b1_ref[...], 0.0)
    hh = jnp.maximum(
        jnp.dot(hh, w2_ref[...], preferred_element_type=f32) + b2_ref[...], 0.0)

    # ---- bias-free combinations -> lane-dense (B, 128) store (logits in lanes 0..2) ----
    logits_ref[...] = (jnp.dot(xc, cc_ref[...], preferred_element_type=f32) +
                       jnp.dot(hh, cd_ref[...], preferred_element_type=f32))


_VMEM = pl.BlockSpec(memory_space=pltpu.MemorySpace.VMEM)


def mask_deep_cross_forward(x_idx, d, packed):
    # d is only used when self.ticket=True (stat bookkeeping), not in the forward output.
    del d
    out = pl.pallas_call(
        _fused_kernel,
        out_shape=jax.ShapeDtypeStruct((BATCH, OUT_PAD), jnp.float32),
        in_specs=[_VMEM] * 18,
        out_specs=_VMEM,
    )(x_idx,
      packed["table_blk"],
      packed["wh1"], packed["bh1"], packed["wh2"], packed["bh2"],
      packed["w_heads"], packed["b_heads"], packed["ef"], packed["ee"],
      packed["cw_exp"], packed["cb_blk"],
      packed["w1_blk"], packed["b1_blk"], packed["w2_blk"], packed["b2_blk"],
      packed["cc_blk"], packed["cd_blk"])
    # preserve the (logit1, logit2, logit3) signature of the torch module
    return out[:, 0:1], out[:, 1:2], out[:, 2:3]


# ---------------- parameter construction (mirrors the torch module) ----------------
def _make_params(key):
    ks = list(jax.random.split(key, 32))
    n = lambda k, s: (0.1 * jax.random.normal(k, s, jnp.float32))
    params = {
        "embed_table": n(ks[0], (FEATURE_NUM, LATENT_DIM)),
        "wh1": n(ks[1], (DNN_DIM, HIDDEN)), "bh1": n(ks[2], (1, HIDDEN)),
        "wh2": n(ks[3], (HIDDEN, HIDDEN)),  "bh2": n(ks[4], (1, HIDDEN)),
        "wf": n(ks[5], (3, HIDDEN, FIELD_NUM)),  "bf": n(ks[6], (3, 1, FIELD_NUM)),
        "we": n(ks[7], (3, HIDDEN, LATENT_DIM)), "be": n(ks[8], (3, 1, LATENT_DIM)),
        "towers": [],
    }
    for k in range(3):
        base = 9 + 7 * k
        params["towers"].append({
            "cw": n(ks[base + 0], (CROSS_NUM, 1, DNN_DIM)),
            "cb": n(ks[base + 1], (CROSS_NUM, 1, DNN_DIM)),
            "w1": n(ks[base + 2], (DNN_DIM, HIDDEN)),
            "b1": n(ks[base + 3], (1, HIDDEN)),
            "w2": n(ks[base + 4], (HIDDEN, HIDDEN)),
            "b2": n(ks[base + 5], (1, HIDDEN)),
            "comb_c": n(ks[base + 6], (DNN_DIM, 1)),
            "comb_d": n(jax.random.fold_in(ks[base + 6], 1), (HIDDEN, 1)),
        })
    return params


def _pack_params(p):
    """One-time (outside jit, numpy) packing into block-diagonal, lane-dense layouts."""
    npf = np.float32
    towers = p["towers"]
    table = np.asarray(p["embed_table"], npf)

    # block-diagonal embedding table for the fused one-hot gather: (F*N, D)
    table_blk = np.zeros((FIELD_NUM * FEATURE_NUM, DNN_DIM), npf)
    for f in range(FIELD_NUM):
        table_blk[f * FEATURE_NUM:(f + 1) * FEATURE_NUM,
                  f * LATENT_DIM:(f + 1) * LATENT_DIM] = table

    # fused, lane-padded mask heads: (H, 128) / (1, 128)
    w_heads = np.zeros((HIDDEN, HEADS_PAD), npf)
    b_heads = np.zeros((1, HEADS_PAD), npf)
    for k in range(N_DOMAINS):
        off = k * HEAD_W
        w_heads[:, off:off + FIELD_NUM] = np.asarray(p["wf"][k], npf)
        w_heads[:, off + FIELD_NUM:off + HEAD_W] = np.asarray(p["we"][k], npf)
        b_heads[:, off:off + FIELD_NUM] = np.asarray(p["bf"][k], npf)
        b_heads[:, off + FIELD_NUM:off + HEAD_W] = np.asarray(p["be"][k], npf)

    # 0/1 expansion matrices: heads(128) -> per-domain-block mask (3*D)
    ef = np.zeros((HEADS_PAD, BLK_DIM), npf)
    ee = np.zeros((HEADS_PAD, BLK_DIM), npf)
    for k in range(N_DOMAINS):
        for f in range(FIELD_NUM):
            ef[k * HEAD_W + f,
               k * DNN_DIM + f * LATENT_DIM:k * DNN_DIM + (f + 1) * LATENT_DIM] = 1.0
        for l in range(LATENT_DIM):
            ee[k * HEAD_W + FIELD_NUM + l,
               k * DNN_DIM + l:(k + 1) * DNN_DIM:LATENT_DIM] = 1.0

    # cross weights expanded so one dot = broadcast(x . w) per domain block
    cw_exp = np.zeros((CROSS_NUM, BLK_DIM, BLK_DIM), npf)
    cb_blk = np.zeros((CROSS_NUM, 1, BLK_DIM), npf)
    for i in range(CROSS_NUM):
        for k in range(N_DOMAINS):
            vec = np.asarray(towers[k]["cw"], npf)[i, 0, :]          # (D,)
            cw_exp[i, k * DNN_DIM:(k + 1) * DNN_DIM,
                   k * DNN_DIM:(k + 1) * DNN_DIM] = vec[:, None]
            cb_blk[i, 0, k * DNN_DIM:(k + 1) * DNN_DIM] = np.asarray(towers[k]["cb"], npf)[i, 0, :]

    # block-diagonal DNN towers (hidden padded 96 -> 128) and combination weights
    w1_blk = np.zeros((BLK_DIM, HPAD), npf)
    b1_blk = np.zeros((1, HPAD), npf)
    w2_blk = np.zeros((HPAD, HPAD), npf)
    b2_blk = np.zeros((1, HPAD), npf)
    cc_blk = np.zeros((BLK_DIM, OUT_PAD), npf)
    cd_blk = np.zeros((HPAD, OUT_PAD), npf)
    for k in range(N_DOMAINS):
        t = towers[k]
        w1_blk[k * DNN_DIM:(k + 1) * DNN_DIM, k * HIDDEN:(k + 1) * HIDDEN] = np.asarray(t["w1"], npf)
        b1_blk[0, k * HIDDEN:(k + 1) * HIDDEN] = np.asarray(t["b1"], npf)[0]
        w2_blk[k * HIDDEN:(k + 1) * HIDDEN, k * HIDDEN:(k + 1) * HIDDEN] = np.asarray(t["w2"], npf)
        b2_blk[0, k * HIDDEN:(k + 1) * HIDDEN] = np.asarray(t["b2"], npf)[0]
        cc_blk[k * DNN_DIM:(k + 1) * DNN_DIM, k] = np.asarray(t["comb_c"], npf)[:, 0]
        cd_blk[k * HIDDEN:(k + 1) * HIDDEN, k] = np.asarray(t["comb_d"], npf)[:, 0]

    packed = dict(
        table_blk=table_blk,
        wh1=p["wh1"], bh1=p["bh1"], wh2=p["wh2"], bh2=p["bh2"],
        w_heads=w_heads, b_heads=b_heads, ef=ef, ee=ee,
        cw_exp=cw_exp, cb_blk=cb_blk,
        w1_blk=w1_blk, b1_blk=b1_blk, w2_blk=w2_blk, b2_blk=b2_blk,
        cc_blk=cc_blk, cd_blk=cd_blk)
    return {k: jnp.asarray(v, jnp.float32) for k, v in packed.items()}


# ---------------- pure-JAX reference (faithful to the torch forward) ----------------
def _ref_forward(x_idx, params):
    embed = jnp.take(params["embed_table"], x_idx, axis=0)
    x_dnn = embed.reshape(BATCH, DNN_DIM)
    h = jax.nn.relu(x_dnn @ params["wh1"] + params["bh1"])
    h = jax.nn.relu(h @ params["wh2"] + params["bh2"])
    outs = []
    for k in range(3):
        fm = jax.nn.sigmoid(TEMP * (h @ params["wf"][k] + params["bf"][k]))
        em = jax.nn.sigmoid(TEMP * (h @ params["we"][k] + params["be"][k]))
        ek = embed * SCALING * fm[:, :, None] * em[:, None, :]
        xk = ek.reshape(BATCH, DNN_DIM)
        p = params["towers"][k]
        x0, xc = xk, xk
        for i in range(CROSS_NUM):
            xw = jnp.sum(xc * p["cw"][i], axis=1, keepdims=True)
            xc = x0 * xw + p["cb"][i] + xc
        hh = jax.nn.relu(xk @ p["w1"] + p["b1"])
        hh = jax.nn.relu(hh @ p["w2"] + p["b2"])
        outs.append(xc @ p["comb_c"] + hh @ p["comb_d"])
    return tuple(outs)


if __name__ == "__main__":
    key = jax.random.PRNGKey(0)
    pkey, xkey, dkey = jax.random.split(key, 3)
    params = _make_params(pkey)
    packed = _pack_params(params)          # packed once, outside jit

    # x: (batch, field_num) integer feature ids; d: (batch,) domain ids (unused in forward)
    x_idx = jax.random.randint(xkey, (BATCH, FIELD_NUM), 0, FEATURE_NUM, dtype=jnp.int32)
    d = jax.random.randint(dkey, (BATCH,), 0, 3, dtype=jnp.int32)

    fwd = jax.jit(mask_deep_cross_forward)
    logit1, logit2, logit3 = fwd(x_idx, d, packed)
    jax.block_until_ready((logit1, logit2, logit3))

    r1, r2, r3 = _ref_forward(x_idx, params)
    assert logit1.shape == (BATCH, 1) and logit2.shape == (BATCH, 1) and logit3.shape == (BATCH, 1)
    # gather / mask broadcast / cross reduction run on the MXU (f32 multi-pass) while the
    # reference uses exact gather + elementwise math -> slightly relaxed tolerance.
    assert jnp.allclose(logit1, r1, rtol=2e-3, atol=2e-4)
    assert jnp.allclose(logit2, r2, rtol=2e-3, atol=2e-4)
    assert jnp.allclose(logit3, r3, rtol=2e-3, atol=2e-4)

    print("KERNEL_OK")
</pallas_src>

<mosaic_0001>
module attributes {stable_mosaic.version = 11 : i64} {
  func.func @_fused_kernel(%arg0: memref<8x8xi32, #tpu.memory_space<vmem>>, %arg1: memref<512x128xf32, #tpu.memory_space<vmem>>, %arg2: memref<128x32xf32, #tpu.memory_space<vmem>>, %arg3: memref<1x32xf32, #tpu.memory_space<vmem>>, %arg4: memref<32x32xf32, #tpu.memory_space<vmem>>, %arg5: memref<1x32xf32, #tpu.memory_space<vmem>>, %arg6: memref<32x128xf32, #tpu.memory_space<vmem>>, %arg7: memref<1x128xf32, #tpu.memory_space<vmem>>, %arg8: memref<128x384xf32, #tpu.memory_space<vmem>>, %arg9: memref<128x384xf32, #tpu.memory_space<vmem>>, %arg10: memref<2x384x384xf32, #tpu.memory_space<vmem>>, %arg11: memref<2x1x384xf32, #tpu.memory_space<vmem>>, %arg12: memref<384x128xf32, #tpu.memory_space<vmem>>, %arg13: memref<1x128xf32, #tpu.memory_space<vmem>>, %arg14: memref<128x128xf32, #tpu.memory_space<vmem>>, %arg15: memref<1x128xf32, #tpu.memory_space<vmem>>, %arg16: memref<384x128xf32, #tpu.memory_space<vmem>>, %arg17: memref<128x128xf32, #tpu.memory_space<vmem>>, %arg18: memref<8x128xf32, #tpu.memory_space<vmem>>) attributes {dimension_semantics = [], scalar_prefetch = 0 : i64, scratch_operands = 0 : i64, tpu.core_type = #tpu.core_type<tc>} {
    %c0 = arith.constant 0 : index
    %c0_0 = arith.constant 0 : index
    %0 = vector.load %arg0[%c0, %c0_0] : memref<8x8xi32, #tpu.memory_space<vmem>>, vector<8x8xi32>
    %1 = tpu.iota {dimensions = array<i32: 1>} : vector<8x512xi32>
    %cst = arith.constant 0.000000e+00 : f32
    %2 = vector.broadcast %cst : f32 to vector<8x512xf32>
    %3 = vector.extract_strided_slice %0 {offsets = [0, 0], sizes = [8, 1], strides = [1, 1]} : vector<8x8xi32> to vector<8x1xi32>
    %c0_i32 = arith.constant 0 : i32
    %4 = vector.broadcast %c0_i32 : i32 to vector<8x1xi32>
    %5 = arith.addi %3, %4 : vector<8x1xi32>
    %6 = vector.broadcast %5 : vector<8x1xi32> to vector<8x512xi32>
    %7 = arith.cmpi eq, %1, %6 : vector<8x512xi32>
    %8 = arith.extui %7 : vector<8x512xi1> to vector<8x512xi32>
    %9 = arith.sitofp %8 : vector<8x512xi32> to vector<8x512xf32>
    %10 = arith.addf %2, %9 : vector<8x512xf32>
    %11 = vector.extract_strided_slice %0 {offsets = [0, 1], sizes = [8, 1], strides = [1, 1]} : vector<8x8xi32> to vector<8x1xi32>
    %c64_i32 = arith.constant 64 : i32
    %12 = vector.broadcast %c64_i32 : i32 to vector<8x1xi32>
    %13 = arith.addi %11, %12 : vector<8x1xi32>
    %14 = vector.broadcast %13 : vector<8x1xi32> to vector<8x512xi32>
    %15 = arith.cmpi eq, %1, %14 : vector<8x512xi32>
    %16 = arith.extui %15 : vector<8x512xi1> to vector<8x512xi32>
    %17 = arith.sitofp %16 : vector<8x512xi32> to vector<8x512xf32>
    %18 = arith.addf %10, %17 : vector<8x512xf32>
    %19 = vector.extract_strided_slice %0 {offsets = [0, 2], sizes = [8, 1], strides = [1, 1]} : vector<8x8xi32> to vector<8x1xi32>
    %c128_i32 = arith.constant 128 : i32
    %20 = vector.broadcast %c128_i32 : i32 to vector<8x1xi32>
    %21 = arith.addi %19, %20 : vector<8x1xi32>
    %22 = vector.broadcast %21 : vector<8x1xi32> to vector<8x512xi32>
    %23 = arith.cmpi eq, %1, %22 : vector<8x512xi32>
    %24 = arith.extui %23 : vector<8x512xi1> to vector<8x512xi32>
    %25 = arith.sitofp %24 : vector<8x512xi32> to vector<8x512xf32>
    %26 = arith.addf %18, %25 : vector<8x512xf32>
    %27 = vector.extract_strided_slice %0 {offsets = [0, 3], sizes = [8, 1], strides = [1, 1]} : vector<8x8xi32> to vector<8x1xi32>
    %c192_i32 = arith.constant 192 : i32
    %28 = vector.broadcast %c192_i32 : i32 to vector<8x1xi32>
    %29 = arith.addi %27, %28 : vector<8x1xi32>
    %30 = vector.broadcast %29 : vector<8x1xi32> to vector<8x512xi32>
    %31 = arith.cmpi eq, %1, %30 : vector<8x512xi32>
    %32 = arith.extui %31 : vector<8x512xi1> to vector<8x512xi32>
    %33 = arith.sitofp %32 : vector<8x512xi32> to vector<8x512xf32>
    %34 = arith.addf %26, %33 : vector<8x512xf32>
    %35 = vector.extract_strided_slice %0 {offsets = [0, 4], sizes = [8, 1], strides = [1, 1]} : vector<8x8xi32> to vector<8x1xi32>
    %c256_i32 = arith.constant 256 : i32
    %36 = vector.broadcast %c256_i32 : i32 to vector<8x1xi32>
    %37 = arith.addi %35, %36 : vector<8x1xi32>
    %38 = vector.broadcast %37 : vector<8x1xi32> to vector<8x512xi32>
    %39 = arith.cmpi eq, %1, %38 : vector<8x512xi32>
    %40 = arith.extui %39 : vector<8x512xi1> to vector<8x512xi32>
    %41 = arith.sitofp %40 : vector<8x512xi32> to vector<8x512xf32>
    %42 = arith.addf %34, %41 : vector<8x512xf32>
    %43 = vector.extract_strided_slice %0 {offsets = [0, 5], sizes = [8, 1], strides = [1, 1]} : vector<8x8xi32> to vector<8x1xi32>
    %c320_i32 = arith.constant 320 : i32
    %44 = vector.broadcast %c320_i32 : i32 to vector<8x1xi32>
    %45 = arith.addi %43, %44 : vector<8x1xi32>
    %46 = vector.broadcast %45 : vector<8x1xi32> to vector<8x512xi32>
    %47 = arith.cmpi eq, %1, %46 : vector<8x512xi32>
    %48 = arith.extui %47 : vector<8x512xi1> to vector<8x512xi32>
    %49 = arith.sitofp %48 : vector<8x512xi32> to vector<8x512xf32>
    %50 = arith.addf %42, %49 : vector<8x512xf32>
    %51 = vector.extract_strided_slice %0 {offsets = [0, 6], sizes = [8, 1], strides = [1, 1]} : vector<8x8xi32> to vector<8x1xi32>
    %c384_i32 = arith.constant 384 : i32
    %52 = vector.broadcast %c384_i32 : i32 to vector<8x1xi32>
    %53 = arith.addi %51, %52 : vector<8x1xi32>
    %54 = vector.broadcast %53 : vector<8x1xi32> to vector<8x512xi32>
    %55 = arith.cmpi eq, %1, %54 : vector<8x512xi32>
    %56 = arith.extui %55 : vector<8x512xi1> to vector<8x512xi32>
    %57 = arith.sitofp %56 : vector<8x512xi32> to vector<8x512xf32>
    %58 = arith.addf %50, %57 : vector<8x512xf32>
    %59 = vector.extract_strided_slice %0 {offsets = [0, 7], sizes = [8, 1], strides = [1, 1]} : vector<8x8xi32> to vector<8x1xi32>
    %c448_i32 = arith.constant 448 : i32
    %60 = vector.broadcast %c448_i32 : i32 to vector<8x1xi32>
    %61 = arith.addi %59, %60 : vector<8x1xi32>
    %62 = vector.broadcast %61 : vector<8x1xi32> to vector<8x512xi32>
    %63 = arith.cmpi eq, %1, %62 : vector<8x512xi32>
    %64 = arith.extui %63 : vector<8x512xi1> to vector<8x512xi32>
    %65 = arith.sitofp %64 : vector<8x512xi32> to vector<8x512xf32>
    %66 = arith.addf %58, %65 : vector<8x512xf32>
    %c0_1 = arith.constant 0 : index
    %c0_2 = arith.constant 0 : index
    %67 = vector.load %arg1[%c0_1, %c0_2] : memref<512x128xf32, #tpu.memory_space<vmem>>, vector<512x128xf32>
    %cst_3 = arith.constant dense<0.000000e+00> : vector<8x128xf32>
    %68 = tpu.matmul %66, %67, %cst_3 {dimension_numbers = #tpu.dot_dimension_numbers<[1], [0], [0], [1], [0, 0, 1, 1], [], []>} : vector<8x512xf32>, vector<512x128xf32>, vector<8x128xf32> -> vector<8x128xf32>
    %c0_4 = arith.constant 0 : index
    %c0_5 = arith.constant 0 : index
    %69 = vector.load %arg2[%c0_4, %c0_5] : memref<128x32xf32, #tpu.memory_space<vmem>>, vector<128x32xf32>
    %cst_6 = arith.constant dense<0.000000e+00> : vector<8x32xf32>
    %70 = tpu.matmul %68, %69, %cst_6 {dimension_numbers = #tpu.dot_dimension_numbers<[1], [0], [0], [1], [0, 0, 1, 1], [], []>} : vector<8x128xf32>, vector<128x32xf32>, vector<8x32xf32> -> vector<8x32xf32>
    %c0_7 = arith.constant 0 : index
    %c0_8 = arith.constant 0 : index
    %71 = vector.load %arg3[%c0_7, %c0_8] : memref<1x32xf32, #tpu.memory_space<vmem>>, vector<1x32xf32>
    %72 = vector.broadcast %71 : vector<1x32xf32> to vector<8x32xf32>
    %73 = arith.addf %70, %72 : vector<8x32xf32>
    %cst_9 = arith.constant 0.000000e+00 : f32
    %74 = vector.broadcast %cst_9 : f32 to vector<8x32xf32>
    %75 = arith.maximumf %73, %74 : vector<8x32xf32>
    %c0_10 = arith.constant 0 : index
    %c0_11 = arith.constant 0 : index
    %76 = vector.load %arg4[%c0_10, %c0_11] : memref<32x32xf32, #tpu.memory_space<vmem>>, vector<32x32xf32>
    %cst_12 = arith.constant dense<0.000000e+00> : vector<8x32xf32>
    %77 = tpu.matmul %75, %76, %cst_12 {dimension_numbers = #tpu.dot_dimension_numbers<[1], [0], [0], [1], [0, 0, 1, 1], [], []>} : vector<8x32xf32>, vector<32x32xf32>, vector<8x32xf32> -> vector<8x32xf32>
    %c0_13 = arith.constant 0 : index
    %c0_14 = arith.constant 0 : index
    %78 = vector.load %arg5[%c0_13, %c0_14] : memref<1x32xf32, #tpu.memory_space<vmem>>, vector<1x32xf32>
    %79 = vector.broadcast %78 : vector<1x32xf32> to vector<8x32xf32>
    %80 = arith.addf %77, %79 : vector<8x32xf32>
    %cst_15 = arith.constant 0.000000e+00 : f32
    %81 = vector.broadcast %cst_15 : f32 to vector<8x32xf32>
    %82 = arith.maximumf %80, %81 : vector<8x32xf32>
    %c0_16 = arith.constant 0 : index
    %c0_17 = arith.constant 0 : index
    %83 = vector.load %arg6[%c0_16, %c0_17] : memref<32x128xf32, #tpu.memory_space<vmem>>, vector<32x128xf32>
    %cst_18 = arith.constant dense<0.000000e+00> : vector<8x128xf32>
    %84 = tpu.matmul %82, %83, %cst_18 {dimension_numbers = #tpu.dot_dimension_numbers<[1], [0], [0], [1], [0, 0, 1, 1], [], []>} : vector<8x32xf32>, vector<32x128xf32>, vector<8x128xf32> -> vector<8x128xf32>
    %c0_19 = arith.constant 0 : index
    %c0_20 = arith.constant 0 : index
    %85 = vector.load %arg7[%c0_19, %c0_20] : memref<1x128xf32, #tpu.memory_space<vmem>>, vector<1x128xf32>
    %86 = vector.broadcast %85 : vector<1x128xf32> to vector<8x128xf32>
    %87 = arith.addf %84, %86 : vector<8x128xf32>
    %cst_21 = arith.constant 1.000000e+00 : f32
    %88 = vector.broadcast %cst_21 : f32 to vector<8x128xf32>
    %89 = arith.mulf %88, %87 : vector<8x128xf32>
    %90 = arith.negf %89 : vector<8x128xf32>
    %91 = math.exp %90 : vector<8x128xf32>
    %cst_22 = arith.constant 1.000000e+00 : f32
    %92 = vector.broadcast %cst_22 : f32 to vector<8x128xf32>
    %93 = arith.addf %92, %91 : vector<8x128xf32>
    %94 = arith.divf %92, %93 : vector<8x128xf32>
    %c0_23 = arith.constant 0 : index
    %c0_24 = arith.constant 0 : index
    %95 = vector.load %arg8[%c0_23, %c0_24] : memref<128x384xf32, #tpu.memory_space<vmem>>, vector<128x384xf32>
    %cst_25 = arith.constant dense<0.000000e+00> : vector<8x384xf32>
    %96 = tpu.matmul %94, %95, %cst_25 {dimension_numbers = #tpu.dot_dimension_numbers<[1], [0], [0], [1], [0, 0, 1, 1], [], []>} : vector<8x128xf32>, vector<128x384xf32>, vector<8x384xf32> -> vector<8x384xf32>
    %c0_26 = arith.constant 0 : index
    %c0_27 = arith.constant 0 : index
    %97 = vector.load %arg9[%c0_26, %c0_27] : memref<128x384xf32, #tpu.memory_space<vmem>>, vector<128x384xf32>
    %cst_28 = arith.constant dense<0.000000e+00> : vector<8x384xf32>
    %98 = tpu.matmul %94, %97, %cst_28 {dimension_numbers = #tpu.dot_dimension_numbers<[1], [0], [0], [1], [0, 0, 1, 1], [], []>} : vector<8x128xf32>, vector<128x384xf32>, vector<8x384xf32> -> vector<8x384xf32>
    %99 = arith.mulf %96, %98 : vector<8x384xf32>
    %100 = tpu.concatenate %68, %68, %68 in 1 : vector<8x128xf32>, vector<8x128xf32>, vector<8x128xf32> -> vector<8x384xf32>
    %cst_29 = arith.constant 2.000000e+00 : f32
    %101 = vector.broadcast %cst_29 : f32 to vector<8x384xf32>
    %102 = arith.mulf %101, %99 : vector<8x384xf32>
    %103 = arith.mulf %100, %102 : vector<8x384xf32>
    %c0_30 = arith.constant 0 : index
    %c0_31 = arith.constant 0 : index
    %c0_32 = arith.constant 0 : index
    %104 = vector.load %arg10[%c0_30, %c0_31, %c0_32] : memref<2x384x384xf32, #tpu.memory_space<vmem>>, vector<1x384x384xf32>
    %105 = vector.shape_cast %104 : vector<1x384x384xf32> to vector<384x384xf32>
    %cst_33 = arith.constant dense<0.000000e+00> : vector<8x384xf32>
    %106 = tpu.matmul %103, %105, %cst_33 {dimension_numbers = #tpu.dot_dimension_numbers<[1], [0], [0], [1], [0, 0, 1, 1], [], []>} : vector<8x384xf32>, vector<384x384xf32>, vector<8x384xf32> -> vector<8x384xf32>
    %107 = arith.mulf %103, %106 : vector<8x384xf32>
    %c0_34 = arith.constant 0 : index
    %c0_35 = arith.constant 0 : index
    %c0_36 = arith.constant 0 : index
    %108 = vector.load %arg11[%c0_34, %c0_35, %c0_36] : memref<2x1x384xf32, #tpu.memory_space<vmem>>, vector<1x1x384xf32>
    %109 = vector.shape_cast %108 : vector<1x1x384xf32> to vector<1x384xf32>
    %110 = vector.broadcast %109 : vector<1x384xf32> to vector<8x384xf32>
    %111 = arith.addf %107, %110 : vector<8x384xf32>
    %112 = arith.addf %111, %103 : vector<8x384xf32>
    %c1 = arith.constant 1 : index
    %c0_37 = arith.constant 0 : index
    %c0_38 = arith.constant 0 : index
    %113 = vector.load %arg10[%c1, %c0_37, %c0_38] : memref<2x384x384xf32, #tpu.memory_space<vmem>>, vector<1x384x384xf32>
    %114 = vector.shape_cast %113 : vector<1x384x384xf32> to vector<384x384xf32>
    %cst_39 = arith.constant dense<0.000000e+00> : vector<8x384xf32>
    %115 = tpu.matmul %112, %114, %cst_39 {dimension_numbers = #tpu.dot_dimension_numbers<[1], [0], [0], [1], [0, 0, 1, 1], [], []>} : vector<8x384xf32>, vector<384x384xf32>, vector<8x384xf32> -> vector<8x384xf32>
    %116 = arith.mulf %103, %115 : vector<8x384xf32>
    %c1_40 = arith.constant 1 : index
    %c0_41 = arith.constant 0 : index
    %c0_42 = arith.constant 0 : index
    %117 = vector.load %arg11[%c1_40, %c0_41, %c0_42] : memref<2x1x384xf32, #tpu.memory_space<vmem>>, vector<1x1x384xf32>
    %118 = vector.shape_cast %117 : vector<1x1x384xf32> to vector<1x384xf32>
    %119 = vector.broadcast %118 : vector<1x384xf32> to vector<8x384xf32>
    %120 = arith.addf %116, %119 : vector<8x384xf32>
    %121 = arith.addf %120, %112 : vector<8x384xf32>
    %c0_43 = arith.constant 0 : index
    %c0_44 = arith.constant 0 : index
    %122 = vector.load %arg12[%c0_43, %c0_44] : memref<384x128xf32, #tpu.memory_space<vmem>>, vector<384x128xf32>
    %cst_45 = arith.constant dense<0.000000e+00> : vector<8x128xf32>
    %123 = tpu.matmul %103, %122, %cst_45 {dimension_numbers = #tpu.dot_dimension_numbers<[1], [0], [0], [1], [0, 0, 1, 1], [], []>} : vector<8x384xf32>, vector<384x128xf32>, vector<8x128xf32> -> vector<8x128xf32>
    %c0_46 = arith.constant 0 : index
    %c0_47 = arith.constant 0 : index
    %124 = vector.load %arg13[%c0_46, %c0_47] : memref<1x128xf32, #tpu.memory_space<vmem>>, vector<1x128xf32>
    %125 = vector.broadcast %124 : vector<1x128xf32> to vector<8x128xf32>
    %126 = arith.addf %123, %125 : vector<8x128xf32>
    %cst_48 = arith.constant 0.000000e+00 : f32
    %127 = vector.broadcast %cst_48 : f32 to vector<8x128xf32>
    %128 = arith.maximumf %126, %127 : vector<8x128xf32>
    %c0_49 = arith.constant 0 : index
    %c0_50 = arith.constant 0 : index
    %129 = vector.load %arg14[%c0_49, %c0_50] : memref<128x128xf32, #tpu.memory_space<vmem>>, vector<128x128xf32>
    %cst_51 = arith.constant dense<0.000000e+00> : vector<8x128xf32>
    %130 = tpu.matmul %128, %129, %cst_51 {dimension_numbers = #tpu.dot_dimension_numbers<[1], [0], [0], [1], [0, 0, 1, 1], [], []>} : vector<8x128xf32>, vector<128x128xf32>, vector<8x128xf32> -> vector<8x128xf32>
    %c0_52 = arith.constant 0 : index
    %c0_53 = arith.constant 0 : index
    %131 = vector.load %arg15[%c0_52, %c0_53] : memref<1x128xf32, #tpu.memory_space<vmem>>, vector<1x128xf32>
    %132 = vector.broadcast %131 : vector<1x128xf32> to vector<8x128xf32>
    %133 = arith.addf %130, %132 : vector<8x128xf32>
    %cst_54 = arith.constant 0.000000e+00 : f32
    %134 = vector.broadcast %cst_54 : f32 to vector<8x128xf32>
    %135 = arith.maximumf %133, %134 : vector<8x128xf32>
    %c0_55 = arith.constant 0 : index
    %c0_56 = arith.constant 0 : index
    %136 = vector.load %arg16[%c0_55, %c0_56] : memref<384x128xf32, #tpu.memory_space<vmem>>, vector<384x128xf32>
    %cst_57 = arith.constant dense<0.000000e+00> : vector<8x128xf32>
    %137 = tpu.matmul %121, %136, %cst_57 {dimension_numbers = #tpu.dot_dimension_numbers<[1], [0], [0], [1], [0, 0, 1, 1], [], []>} : vector<8x384xf32>, vector<384x128xf32>, vector<8x128xf32> -> vector<8x128xf32>
    %c0_58 = arith.constant 0 : index
    %c0_59 = arith.constant 0 : index
    %138 = vector.load %arg17[%c0_58, %c0_59] : memref<128x128xf32, #tpu.memory_space<vmem>>, vector<128x128xf32>
    %cst_60 = arith.constant dense<0.000000e+00> : vector<8x128xf32>
    %139 = tpu.matmul %135, %138, %cst_60 {dimension_numbers = #tpu.dot_dimension_numbers<[1], [0], [0], [1], [0, 0, 1, 1], [], []>} : vector<8x128xf32>, vector<128x128xf32>, vector<8x128xf32> -> vector<8x128xf32>
    %140 = arith.addf %137, %139 : vector<8x128xf32>
    %c0_61 = arith.constant 0 : index
    %c0_62 = arith.constant 0 : index
    %141 = vector.load %arg18[%c0_61, %c0_62] : memref<8x128xf32, #tpu.memory_space<vmem>>, vector<8x128xf32>
    tpu.vector_store %arg18[%c0_61, %c0_62], %140 {strides = array<i32>} : memref<8x128xf32, #tpu.memory_space<vmem>>, vector<8x128xf32>,
    return
  }
}

</mosaic_0001>

<bundles_post_ra>
// kernel: mask_deep_cross_forward.1
= control target key start
LH: loop header
LB: loop body
LE: loop exit
PB: predicated region body
PF: predicated region fallthrough
CT: control target
= control target key end

     0   :  { %s2938_s0 = inlined_call_operand.hbm [shape: s32[8,8], index: 0, kind: input, shape index: {}]   ;;  %s2939_s1 = inlined_call_operand.hbm [shape: f32[512,128], index: 1, kind: input, shape index: {}]   ;;  %s2940_s2 = inlined_call_operand.vmem [shape: f32[128,32], index: 2, kind: input, shape index: {}]   ;;  %s2941_s3 = inlined_call_operand.hbm [shape: f32[1,32], index: 3, kind: input, shape index: {}]   ;;  %s2942_s4 = inlined_call_operand.hbm [shape: f32[32,32], index: 4, kind: input, shape index: {}]   ;;  %s2943_s5 = inlined_call_operand.hbm [shape: f32[1,32], index: 5, kind: input, shape index: {}]   ;;  %s2944_s6 = inlined_call_operand.hbm [shape: f32[32,128], index: 6, kind: input, shape index: {}]   ;;  %s2945_s7 = inlined_call_operand.hbm [shape: f32[1,128], index: 7, kind: input, shape index: {}]   ;;  %s2946_s8 = inlined_call_operand.hbm [shape: f32[128,384], index: 8, kind: input, shape index: {}]   ;;  %s2947_s9 = inlined_call_operand.hbm [shape: f32[128,384], index: 9, kind: input, shape index: {}]   ;;  %s2948_s10 = inlined_call_operand.hbm [shape: f32[2,384,384], index: 10, kind: input, shape index: {}]   ;;  %s2949_s11 = inlined_call_operand.hbm [shape: f32[2,1,384], index: 11, kind: input, shape index: {}]   ;;  %s2950_s12 = inlined_call_operand.hbm [shape: f32[384,128], index: 12, kind: input, shape index: {}]   ;;  %s2951_s13 = inlined_call_operand.hbm [shape: f32[1,128], index: 13, kind: input, shape index: {}]   ;;  %s2952_s14 = inlined_call_operand.hbm [shape: f32[128,128], index: 14, kind: input, shape index: {}]   ;;  %s2953_s15 = inlined_call_operand.hbm [shape: f32[1,128], index: 15, kind: input, shape index: {}]   ;;  %s2954_s16 = inlined_call_operand.hbm [shape: f32[384,128], index: 16, kind: input, shape index: {}]   ;;  %s2955_s17 = inlined_call_operand.hbm [shape: f32[128,128], index: 17, kind: input, shape index: {}]   ;;  %s2956_s18 = inlined_call_operand.vmem [shape: f32[8,128], index: 18, kind: output, shape index: {}]  }
   0x1   :  { %2958 = sst [smem:[#allocation37_spill]] %s2938_s0 }
   0x2   :  { %2959 = sst [smem:[#allocation38_spill]] %s2939_s1 }
   0x3   :  { %2960 = sst [smem:[#allocation39_spill]] %s2940_s2 }
   0x4   :  { %23 = vsyncpa [#allocation3], 0 }
   0x5   :  { %24 = vsyncpa [#allocation5], 0 }
   0x6   :  { %25 = vsyncpa [#allocation8], 0 }
   0x7   :  { %26 = vsyncpa [#allocation11], 0 }
   0x8   :  { %27 = vsyncpa [#allocation14], 0 }
   0x9   :  { %28 = vsyncpa [#allocation17], 0 }
   0xa   :  { %29 = vsyncpa [#allocation20], 0 }
   0xb   :  { %30 = vsyncpa [#allocation23], 0  ;;  %s2961_s29 = sld [smem:[#allocation38_spill]] }
  0x11   :  { %s47_s30 = sshll.u32 %s2961_s29, 4  ;;  %s48_s30 = int_to_ptr.hbm [resolvable:$true] %s47_s30 }
  0x12   :  { %31 = vsyncpa [#allocation26], 0  ;;  %s2476_s0 = smov [#allocation4]   ;;  %s73_s21 = sshll.u32 %s2942_s4, 4  ;;  %s74_s21 = int_to_ptr.hbm [resolvable:$true] %s73_s21 }
  0x13   :  { %s49_s19 = sshll.u32 %s2476_s0, 4  ;;  %s2477_s22 = smov 128   ;;  %s50_s19 = int_to_ptr.vmem [resolvable:$true] %s49_s19 }
  0x14   :  { %s2478_s2 = smov 8   ;;  %s2479_s23 = smov [#allocation7]  }
  0x15   :  { %55 = dma.hbm_to_vmem [thread:$0]  %s48_s30, 8192, %s50_s19, [#allocation5], %s2477_s22, %s2477_s22, %s2478_s2  }
  0x16   :  { %s75_s24 = sshll.u32 %s2479_s23, 4  ;;  %s97_s27 = sshll.u32 %s2944_s6, 4  ;;  %s76_s24 = int_to_ptr.vmem [resolvable:$true] %s75_s24  ;;  %s98_s27 = int_to_ptr.hbm [resolvable:$true] %s97_s27 }
  0x17   :  { %81 = dma.hbm_to_vmem [thread:$0]  %s74_s21, 512, %s76_s24, [#allocation8], %s2477_s22, %s2477_s22, %s2478_s2  }
  0x18   :  { %s121_s29 = sshll.u32 %s2946_s8, 4  ;;  %s2480_s0 = smov [#allocation10]   ;;  %s122_s29 = int_to_ptr.hbm [resolvable:$true] %s121_s29 }
  0x19   :  { %s99_s1 = sshll.u32 %s2480_s0, 4  ;;  %s2481_s30 = smov [#allocation13]   ;;  %s100_s1 = int_to_ptr.vmem [resolvable:$true] %s99_s1 }
  0x1a   :  { %105 = dma.hbm_to_vmem [thread:$0]  %s98_s27, 512, %s100_s1, [#allocation11], %s2477_s22, %s2477_s22, %s2478_s2  }
  0x1b   :  { %s123_s6 = sshll.u32 %s2481_s30, 4  ;;  %s2482_s19 = smov 384   ;;  %s124_s6 = int_to_ptr.vmem [resolvable:$true] %s123_s6 }
  0x1c   :  { %s2483_s20 = smov 24   ;;  %s147_s8 = sshll.u32 %s2948_s10, 4  ;;  %s148_s8 = int_to_ptr.hbm [resolvable:$true] %s147_s8 }
  0x1d   :  { %129 = dma.hbm_to_vmem [thread:$0]  %s122_s29, 6144, %s124_s6, [#allocation14], %s2482_s19, %s2482_s19, %s2483_s20  }
  0x1e   :  { %s2484_s24 = smov [#allocation16]   ;;  %s173_s27 = sshll.u32 %s2950_s12, 4  ;;  %s174_s27 = int_to_ptr.hbm [resolvable:$true] %s173_s27 }
  0x1f   :  { %s149_s25 = sshll.u32 %s2484_s24, 4  ;;  %s2485_s28 = smov [#allocation19]   ;;  %s150_s25 = int_to_ptr.vmem [resolvable:$true] %s149_s25 }
  0x20   :  { %155 = dma.hbm_to_vmem [thread:$0]  %s148_s8, 36864, %s150_s25, [#allocation17], %s2482_s19, %s2482_s19, %s2483_s20  }
  0x21   :  { %s175_s0 = sshll.u32 %s2485_s28, 4  ;;  %s197_s30 = sshll.u32 %s2952_s14, 4  ;;  %s176_s0 = int_to_ptr.vmem [resolvable:$true] %s175_s0  ;;  %s198_s30 = int_to_ptr.hbm [resolvable:$true] %s197_s30 }
  0x22   :  { %181 = dma.hbm_to_vmem [thread:$0]  %s174_s27, 6144, %s176_s0, [#allocation20], %s2477_s22, %s2477_s22, %s2478_s2  }
  0x23   :  { %s221_s12 = sshll.u32 %s2954_s16, 4  ;;  %s2486_s21 = smov [#allocation22]   ;;  %s222_s12 = int_to_ptr.hbm [resolvable:$true] %s221_s12 }
  0x24   :  { %s199_s23 = sshll.u32 %s2486_s21, 4  ;;  %s2487_s8 = smov [#allocation25]   ;;  %s200_s23 = int_to_ptr.vmem [resolvable:$true] %s199_s23 }
  0x25   :  { %205 = dma.hbm_to_vmem [thread:$0]  %s198_s30, 2048, %s200_s23, [#allocation23], %s2477_s22, %s2477_s22, %s2478_s2  }
  0x26   :  { %s223_s14 = sshll.u32 %s2487_s8, 4  ;;  %s2962_s26 = sld [smem:[#allocation37_spill]]  ;;  %s224_s14 = int_to_ptr.vmem [resolvable:$true] %s223_s14 }
  0x27   :  { %229 = dma.hbm_to_vmem [thread:$0]  %s222_s12, 6144, %s224_s14, [#allocation26], %s2477_s22, %s2477_s22, %s2478_s2  }
  0x28   :  { %s63_s28 = sshll.u32 %s2941_s3, 4  ;;  %s2488_s0 = smov [#allocation2]   ;;  %s64_s28 = int_to_ptr.hbm [resolvable:$true] %s63_s28 }
  0x29   :  { %s39_s29 = sshll.u32 %s2488_s0, 4  ;;  %s2489_s1 = smov [#allocation6]   ;;  %s40_s29 = int_to_ptr.vmem [resolvable:$true] %s39_s29 }
  0x2a   :  { %s65_s30 = sshll.u32 %s2489_s1, 4  ;;  %s87_s21 = sshll.u32 %s2943_s5, 4  ;;  %s66_s30 = int_to_ptr.vmem [resolvable:$true] %s65_s30  ;;  %s88_s21 = int_to_ptr.hbm [resolvable:$true] %s87_s21 }
  0x2b   :  { %68 = dma.hbm_to_vmem [thread:$0]  %s64_s28, 16, %s66_s30, [#allocation5]  }
  0x2c   :  { %s37_s4 = sshll.u32 %s2962_s26, 4  ;;  %s111_s8 = sshll.u32 %s2945_s7, 4  ;;  %s38_s4 = int_to_ptr.hbm [resolvable:$true] %s37_s4  ;;  %s112_s8 = int_to_ptr.hbm [resolvable:$true] %s111_s8 }
  0x2d   :  { %42 = dma.hbm_to_vmem [thread:$0]  %s38_s4, 128, %s40_s29, [#allocation3]  }
  0x2e   :  { %s2490_s14 = smov [#allocation9]   ;;  %s2491_s24 = smov [#allocation12]  }
  0x2f   :  { %s89_s3 = sshll.u32 %s2490_s14, 4  ;;  %s113_s25 = sshll.u32 %s2491_s24, 4  ;;  %s90_s3 = int_to_ptr.vmem [resolvable:$true] %s89_s3  ;;  %s114_s25 = int_to_ptr.vmem [resolvable:$true] %s113_s25 }
  0x30   :  { %92 = dma.hbm_to_vmem [thread:$0]  %s88_s21, 16, %s90_s3, [#allocation8]  }
  0x31   :  { %s134_s16 = sshll.u32 %s2947_s9, 4  ;;  %s160_s28 = sshll.u32 %s2949_s11, 4  ;;  %s135_s16 = int_to_ptr.hbm [resolvable:$true] %s134_s16  ;;  %s161_s28 = int_to_ptr.hbm [resolvable:$true] %s160_s28 }
  0x32   :  { %116 = dma.hbm_to_vmem [thread:$0]  %s112_s8, 16, %s114_s25, [#allocation11]  }
  0x33   :  { %s2492_s0 = smov [#allocation15]   ;;  %s2493_s29 = smov [#allocation18]  }
  0x34   :  { %s136_s7 = sshll.u32 %s2492_s0, 4  ;;  %s162_s1 = sshll.u32 %s2493_s29, 4  ;;  %s137_s7 = int_to_ptr.vmem [resolvable:$true] %s136_s7  ;;  %s163_s1 = int_to_ptr.vmem [resolvable:$true] %s162_s1 }
  0x35   :  { %142 = dma.hbm_to_vmem [thread:$0]  %s135_s16, 6144, %s137_s7, [#allocation14], %s2482_s19, %s2482_s19, %s2483_s20  }
  0x36   :  { %s2494_s30 = smov 48   ;;  %s2495_s9 = smov 3  }
  0x37   :  { %168 = dma.hbm_to_vmem [thread:$0]  %s161_s28, 96, %s163_s1, [#allocation17], %s2494_s30, %s2494_s30, %s2495_s9  }
  0x38   :  { %s187_s21 = sshll.u32 %s2951_s13, 4  ;;  %s2496_s11 = smov [#allocation21]   ;;  %s188_s21 = int_to_ptr.hbm [resolvable:$true] %s187_s21 }
  0x39   :  { %s189_s23 = sshll.u32 %s2496_s11, 4  ;;  %s211_s14 = sshll.u32 %s2953_s15, 4  ;;  %s190_s23 = int_to_ptr.vmem [resolvable:$true] %s189_s23  ;;  %s212_s14 = int_to_ptr.hbm [resolvable:$true] %s211_s14 }
  0x3a   :  { %192 = dma.hbm_to_vmem [thread:$0]  %s188_s21, 16, %s190_s23, [#allocation20]  }
  0x3b   :  { %s2497_s19 = smov [#allocation24]   ;;  %s234_s25 = sshll.u32 %s2955_s17, 4  ;;  %s235_s25 = int_to_ptr.hbm [resolvable:$true] %s234_s25 }
  0x3c   :  { %s213_s20 = sshll.u32 %s2497_s19, 4  ;;  %s2498_s13 = smov [#allocation27]   ;;  %s214_s20 = int_to_ptr.vmem [resolvable:$true] %s213_s20 }
  0x3d   :  { %216 = dma.hbm_to_vmem [thread:$0]  %s212_s14, 16, %s214_s20, [#allocation23]  }
  0x3e   :  { %s236_s26 = sshll.u32 %s2498_s13, 4  ;;  %s237_s26 = int_to_ptr.vmem [resolvable:$true] %s236_s26 }
  0x3f   :  { %242 = dma.hbm_to_vmem [thread:$0]  %s235_s25, 2048, %s237_s26, [#allocation26], %s2477_s22, %s2477_s22, %s2478_s2  }
  0x40   :  { %2458 = dma.done.wait [#allocation3], 128  }
  0x41   :  { %2459 = vsyncadd [#allocation3], 4294967168 }
  0x42   :  { %2460 = dma.done.wait [#allocation5], 8208  }
  0x43   :  { %2461 = vsyncadd [#allocation5], 4294959088 }
  0x44   :  { %2462 = dma.done.wait [#allocation8], 528  }
  0x45   :  { %2463 = vsyncadd [#allocation8], 4294966768 }
  0x46   :  { %2464 = dma.done.wait [#allocation11], 528  }
  0x47   :  { %2465 = vsyncadd [#allocation11], 4294966768 }
  0x48   :  { %2466 = dma.done.wait [#allocation14], 12288  }
  0x49   :  { %2467 = vsyncadd [#allocation14], 4294955008 }
  0x4a   :  { %2468 = dma.done.wait [#allocation17], 36960  }
  0x4b   :  { %2469 = vsyncadd [#allocation17], 4294930336 }
  0x4c   :  { %2470 = dma.done.wait [#allocation20], 6160  }
  0x4d   :  { %2471 = vsyncadd [#allocation20], 4294961136 }
  0x4e   :  { %2472 = dma.done.wait [#allocation23], 2064  }
  0x4f   :  { %2473 = vsyncadd [#allocation23], 4294965232 }
  0x50   :  { %2474 = dma.done.wait [#allocation26], 8192  }
  0x51   :  { %2475 = vsyncadd [#allocation26], 4294959104  ;;  %v2499_v0 = vmov 0   ;;  %v2500_v1 = vmov 2   ;;  %v2501_v2 = vmov 4   ;;  %v311_v3 = vld [vmem:[#allocation2] sm:$0xff] }
  0x52   :  { %2032 = vset.pattern.permute.xlu0 %v2499_v0  ;;  %2034 = vset.pattern.permute.xlu1 %v2500_v1  ;;  %v491_v4 = vld [vmem:[#allocation4 + $0x78] sm:$0xff]  ;;  %v356_v6 = vadd.s32 128, %v311_v3  ;;  %v396_v9 = vadd.s32 256, %v311_v3  ;;  %v490_v10 = vld [vmem:[#allocation4 + $0x70] sm:$0xff]  ;;  %v489_v14 = vld [vmem:[#allocation4 + $0x68] sm:$0xff]  ;;  %v336_v18 = vadd.s32 64, %v311_v3 }
  0x53   :  { %2036 = vset.pattern.permute.xlu2 %v2501_v2  ;;  %v507_v5 = vld [vmem:[#allocation4 + $0xf8] sm:$0xff]  ;;  %318 = vperm.xlu0 %2032, %v311_v3   ;;  %v506_v11 = vld [vmem:[#allocation4 + $0xf0] sm:$0xff]  ;;  %v505_v15 = vld [vmem:[#allocation4 + $0xe8] sm:$0xff]  ;;  %v376_v19 = vadd.s32 192, %v311_v3  ;;  %v2502_v20 = vmov 1   ;;  %v416_v21 = vadd.s32 320, %v311_v3 }
  0x54   :  { %540 = vmatpush.msra.mxu0 %v491_v4  ;;  %v523_v7 = vld [vmem:[#allocation4 + $0x178] sm:$0xff]  ;;  %560 = vmatpush.msra.mxu1 %v507_v5  ;;  %v522_v12 = vld [vmem:[#allocation4 + $0x170] sm:$0xff]  ;;  %v521_v16 = vld [vmem:[#allocation4 + $0x168] sm:$0xff]  ;;  %v2503_v22 = vmov 3   ;;  %v2504_v23 = vmov 5   ;;  %v436_v24 = vadd.s32 384, %v311_v3 }
  0x55   :  { %v539_v8 = vld [vmem:[#allocation4 + $0x1f8] sm:$0xff]  ;;  %580 = vmatpush.msra.mxu2 %v523_v7  ;;  %358 = vperm.xlu1 %2034, %v356_v6   ;;  %v538_v13 = vld [vmem:[#allocation4 + $0x1f0] sm:$0xff]  ;;  %v537_v17 = vld [vmem:[#allocation4 + $0x1e8] sm:$0xff]  ;;  %v456_v25 = vadd.s32 448, %v311_v3  ;;  %v2505_v26 = vmov 7   ;;  %v2506_v27 = vmov 6  }
  0x56   :  { %600 = vmatpush.msra.mxu3 %v539_v8  ;;  %398 = vperm.xlu2 %2036, %v396_v9   ;;  %v488_v28 = vld [vmem:[#allocation4 + $0x60] sm:$0xff]  ;;  %v487_v32 = vld [vmem:[#allocation4 + $0x58] sm:$0xff]  ;;  %v486_v36 = vld [vmem:[#allocation4 + $0x50] sm:$0xff]  ;;  %v312_v8 = vlaneseq  ;;  %s2963_s22 = sld [smem:[#allocation39_spill]] }
  0x57   :  { %541 = vmatpush.msra.mxu0 %v490_v10  ;;  %561 = vmatpush.msra.mxu1 %v506_v11  ;;  %v504_v29 = vld [vmem:[#allocation4 + $0xe0] sm:$0xff]  ;;  %v503_v33 = vld [vmem:[#allocation4 + $0xd8] sm:$0xff]  ;;  %v502_v37 = vld [vmem:[#allocation4 + $0xd0] sm:$0xff] }
  0x58   :  { %581 = vmatpush.msra.mxu2 %v522_v12  ;;  %601 = vmatpush.msra.mxu3 %v538_v13  ;;  %v520_v30 = vld [vmem:[#allocation4 + $0x160] sm:$0xff]  ;;  %v519_v34 = vld [vmem:[#allocation4 + $0x158] sm:$0xff]  ;;  %v518_v38 = vld [vmem:[#allocation4 + $0x150] sm:$0xff] }
  0x59   :  { %542 = vmatpush.msra.mxu0 %v489_v14  ;;  %562 = vmatpush.msra.mxu1 %v505_v15  ;;  %v536_v31 = vld [vmem:[#allocation4 + $0x1e0] sm:$0xff]  ;;  %v535_v35 = vld [vmem:[#allocation4 + $0x1d8] sm:$0xff]  ;;  %v534_v39 = vld [vmem:[#allocation4 + $0x1d0] sm:$0xff] }
  0x5a   :  { %582 = vmatpush.msra.mxu2 %v521_v16  ;;  %602 = vmatpush.msra.mxu3 %v537_v17  ;;  %v485_v40 = vld [vmem:[#allocation4 + $0x48] sm:$0xff]  ;;  %v484_v44 = vld [vmem:[#allocation4 + $0x40] sm:$0xff]  ;;  %v483_v48 = vld [vmem:[#allocation4 + $0x38] sm:$0xff]  ;;  %v2686_v17 = vand.u32 127, %v312_v8 }
  0x5b   :  { %2033 = vset.pattern.permute.xlu0 %v2502_v20  ;;  %543 = vmatpush.msra.mxu0 %v488_v28  ;;  %v501_v41 = vld [vmem:[#allocation4 + $0xc8] sm:$0xff]  ;;  %v500_v45 = vld [vmem:[#allocation4 + $0xc0] sm:$0xff]  ;;  %v499_v49 = vld [vmem:[#allocation4 + $0xb8] sm:$0xff] }
  0x5c   :  { %338 = vperm.xlu0 %2033, %v336_v18   ;;  %563 = vmatpush.msra.mxu1 %v504_v29  ;;  %v517_v42 = vld [vmem:[#allocation4 + $0x148] sm:$0xff]  ;;  %v516_v46 = vld [vmem:[#allocation4 + $0x140] sm:$0xff]  ;;  %v515_v50 = vld [vmem:[#allocation4 + $0x138] sm:$0xff]  ;;  %v2507_v29 = vmov 0.0  }
  0x5d   :  { %2035 = vset.pattern.permute.xlu1 %v2503_v22  ;;  %583 = vmatpush.msra.mxu2 %v520_v30  ;;  %v533_v43 = vld [vmem:[#allocation4 + $0x1c8] sm:$0xff]  ;;  %v532_v47 = vld [vmem:[#allocation4 + $0x1c0] sm:$0xff]  ;;  %v531_v51 = vld [vmem:[#allocation4 + $0x1b8] sm:$0xff]  ;;  %v2697_v22 = vadd.s32 128, %v2686_v17 }
  0x5e   :  { %378 = vperm.xlu1 %2035, %v376_v19   ;;  %2037 = vset.pattern.permute.xlu2 %v2504_v23  ;;  %v482_v52 = vld [vmem:[#allocation4 + $0x30] sm:$0xff]  ;;  %v481_v56 = vld [vmem:[#allocation4 + $0x28] sm:$0xff]  ;;  %v480_v61 = vld [vmem:[#allocation4 + $0x20] sm:$0xff]  ;;  %v2700_v23 = vadd.s32 256, %v2686_v17 }
  0x5f   :  { %418 = vperm.xlu2 %2037, %v416_v21   ;;  %603 = vmatpush.msra.mxu3 %v536_v31  ;;  %v498_v53 = vld [vmem:[#allocation4 + $0xb0] sm:$0xff]  ;;  %v497_v57 = vld [vmem:[#allocation4 + $0xa8] sm:$0xff]  ;;  %v496_v62 = vld [vmem:[#allocation4 + $0xa0] sm:$0xff] }
  0x60   :  { %544 = vmatpush.msra.mxu0 %v487_v32  ;;  %564 = vmatpush.msra.mxu1 %v503_v33  ;;  %v514_v54 = vld [vmem:[#allocation4 + $0x130] sm:$0xff]  ;;  %v513_v59 = vld [vmem:[#allocation4 + $0x128] sm:$0xff]  ;;  %v512_v63 = vld [vmem:[#allocation4 + $0x120] sm:$0xff] }
  0x61   :  { %584 = vmatpush.msra.mxu2 %v519_v34  ;;  %604 = vmatpush.msra.mxu3 %v535_v35  ;;  %v530_v55 = vld [vmem:[#allocation4 + $0x1b0] sm:$0xff]  ;;  %v529_v60 = vld [vmem:[#allocation4 + $0x1a8] sm:$0xff]  ;;  %v528_v0 = vld [vmem:[#allocation4 + $0x1a0] sm:$0xff] }
  0x62   :  { %545 = vmatpush.msra.mxu0 %v486_v36  ;;  %565 = vmatpush.msra.mxu1 %v502_v37  ;;  %v479_v1 = vld [vmem:[#allocation4 + $0x18] sm:$0xff]  ;;  %v478_v5 = vld [vmem:[#allocation4 + $0x10] sm:$0xff]  ;;  %v477_v10 = vld [vmem:[#allocation4 + $0x8] sm:$0xff] }
  0x63   :  { %585 = vmatpush.msra.mxu2 %v518_v38  ;;  %605 = vmatpush.msra.mxu3 %v534_v39  ;;  %v495_v2 = vld [vmem:[#allocation4 + $0x98] sm:$0xff]  ;;  %v494_v6 = vld [vmem:[#allocation4 + $0x90] sm:$0xff]  ;;  %v493_v11 = vld [vmem:[#allocation4 + $0x88] sm:$0xff] }
  0x64   :  { %2040 = vset.pattern.permute.xlu0 %v2505_v26  ;;  %546 = vmatpush.msra.mxu0 %v485_v40  ;;  %v511_v3 = vld [vmem:[#allocation4 + $0x118] sm:$0xff]  ;;  %v510_v7 = vld [vmem:[#allocation4 + $0x110] sm:$0xff]  ;;  %v509_v12 = vld [vmem:[#allocation4 + $0x108] sm:$0xff] }
  0x65   :  { %566 = vmatpush.msra.mxu1 %v501_v41  ;;  %586 = vmatpush.msra.mxu2 %v517_v42  ;;  %v527_v4 = vld [vmem:[#allocation4 + $0x198] sm:$0xff]  ;;  %v526_v9 = vld [vmem:[#allocation4 + $0x190] sm:$0xff]  ;;  %v525_v13 = vld [vmem:[#allocation4 + $0x188] sm:$0xff] }
  0x66   :  { %2038 = vset.pattern.permute.xlu1 %v2506_v27  ;;  %606 = vmatpush.msra.mxu3 %v533_v43  ;;  %v476_v14 = vld [vmem:[#allocation4] sm:$0xff]  ;;  %v635_v20 = vld [vmem:[%s2963_s22 + $0x78] sm:$0xff]  ;;  %v634_v21 = vld [vmem:[%s2963_s22 + $0x70] sm:$0xff] }
  0x67   :  { %438 = vperm.xlu1 %2038, %v436_v24   ;;  %2039 = vset.pattern.permute.xlu2 %v2505_v26  ;;  %v492_v15 = vld [vmem:[#allocation4 + $0x80] sm:$0xff]  ;;  %v2703_v24 = vadd.s32 384, %v2686_v17  ;;  %v632_v28 = vld [vmem:[%s2963_s22 + $0x60] sm:$0xff]  ;;  %v631_v34 = vld [vmem:[%s2963_s22 + $0x58] sm:$0xff] }
  0x68   :  { %458 = vperm.xlu2 %2039, %v456_v25   ;;  %547 = vmatpush.msra.mxu0 %v484_v44  ;;  %v508_v16 = vld [vmem:[#allocation4 + $0x100] sm:$0xff]  ;;  %v630_v36 = vld [vmem:[%s2963_s22 + $0x50] sm:$0xff] }
  0x69   :  { %567 = vmatpush.msra.mxu1 %v500_v45  ;;  %587 = vmatpush.msra.mxu2 %v516_v46  ;;  %v524_v19 = vld [vmem:[#allocation4 + $0x180] sm:$0xff] }
  0x6a   :  { %607 = vmatpush.msra.mxu3 %v532_v47  ;;  %548 = vmatpush.msra.mxu0 %v483_v48  ;;  %v633_v26 = vld [vmem:[%s2963_s22 + $0x68] sm:$0xff]  ;;  %v628_v47 = vld [vmem:[%s2963_s22 + $0x40] sm:$0xff] }
  0x6b   :  { %568 = vmatpush.msra.mxu1 %v499_v49  ;;  %588 = vmatpush.msra.mxu2 %v515_v50  ;;  %v629_v41 = vld [vmem:[%s2963_s22 + $0x48] sm:$0xff] }
  0x6c   :  { %608 = vmatpush.msra.mxu3 %v531_v51  ;;  %549 = vmatpush.msra.mxu0 %v482_v52 }
  0x6d   :  { %569 = vmatpush.msra.mxu1 %v498_v53  ;;  %589 = vmatpush.msra.mxu2 %v514_v54 }
  0x6e   :  { %609 = vmatpush.msra.mxu3 %v530_v55  ;;  %550 = vmatpush.msra.mxu0 %v481_v56 }
  0x6f   :  { %570 = vmatpush.msra.mxu1 %v497_v57  ;;  %590 = vmatpush.msra.mxu2 %v513_v59  ;;  %v627_v57 = vld [vmem:[%s2963_s22 + $0x38] sm:$0xff] }
  0x70   :  { %610 = vmatpush.msra.mxu3 %v529_v60  ;;  %551 = vmatpush.msra.mxu0 %v480_v61 }
  0x71   :  { %571 = vmatpush.msra.mxu1 %v496_v62  ;;  %591 = vmatpush.msra.mxu2 %v512_v63  ;;  %v626_v62 = vld [vmem:[%s2963_s22 + $0x30] sm:$0xff] }
  0x72   :  { %611 = vmatpush.msra.mxu3 %v528_v0  ;;  %552 = vmatpush.msra.mxu0 %v479_v1 }
  0x73   :  { %572 = vmatpush.msra.mxu1 %v495_v2  ;;  %592 = vmatpush.msra.mxu2 %v511_v3 }
  0x74   :  { %612 = vmatpush.msra.mxu3 %v527_v4  ;;  %553 = vmatpush.msra.mxu0 %v478_v5 }
  0x75   :  { %573 = vmatpush.msra.mxu1 %v494_v6  ;;  %593 = vmatpush.msra.mxu2 %v510_v7 }
  0x76   :  { %613 = vmatpush.msra.mxu3 %v526_v9  ;;  %554 = vmatpush.msra.mxu0 %v477_v10 }
  0x77   :  { %574 = vmatpush.msra.mxu1 %v493_v11  ;;  %594 = vmatpush.msra.mxu2 %v509_v12 }
  0x78   :  { %614 = vmatpush.msra.mxu3 %v525_v13  ;;  %555 = vmatpush.msra.mxu0 %v476_v14 }
  0x79   :  { %575 = vmatpush.msra.mxu1 %v492_v15  ;;  %595 = vmatpush.msra.mxu2 %v508_v16 }
  0x7a   :  { %615 = vmatpush.msra.mxu3 %v524_v19  ;;  %640 = vmatpush.msrb.mxu0 %v635_v20 }
  0x7c   :  { %641 = vmatpush.msrb.mxu0 %v634_v21 }
  0x7e   :  { %642 = vmatpush.msrb.mxu0 %v633_v26 }
  0x80   :  { %643 = vmatpush.msrb.mxu0 %v632_v28 }
  0x82   :  { %644 = vmatpush.msrb.mxu0 %v631_v34 }
  0x84   :  { %645 = vmatpush.msrb.mxu0 %v630_v36 }
  0x86   :  { %646 = vmatpush.msrb.mxu0 %v629_v41  ;;  %v620_v41 = vld [vmem:[%s2963_s22] sm:$0xff] }
  0x88   :  { %647 = vmatpush.msrb.mxu0 %v628_v47 }
  0x8a   :  { %648 = vmatpush.msrb.mxu0 %v627_v57 }
  0x8c   :  { %649 = vmatpush.msrb.mxu0 %v626_v62  ;;  %v790_v62 = vld [vmem:[#allocation13 + $0x170] sm:$0xff] }
  0xb0   :  { %v2684_v58 = vpop.permute.xlu2 %398 }
  0xb1   :  { %vm400_vm0 = vcmp.eq.s32.totalorder %v2686_v17, %v2684_v58  ;;  %vm401_vm1 = vcmp.eq.s32.totalorder %v2697_v22, %v2684_v58  ;;  %vm402_vm2 = vcmp.eq.s32.totalorder %v2700_v23, %v2684_v58  ;;  %vm403_vm3 = vcmp.eq.s32.totalorder %v2703_v24, %v2684_v58 }
  0xb2   :  { %v2720_v30 = vsel %vm400_vm0, 1.0, %v2507_v29  ;;  %v2723_v31 = vsel %vm401_vm1, 1.0, %v2507_v29  ;;  %v2726_v32 = vsel %vm402_vm2, 1.0, %v2507_v29  ;;  %v2729_v33 = vsel %vm403_vm3, 1.0, %v2507_v29 }
  0xb9   :  { %v2688_v18 = vpop.permute.xlu2 %418 }
  0xba   :  { %vm420_vm12 = vcmp.eq.s32.totalorder %v2686_v17, %v2688_v18  ;;  %vm421_vm13 = vcmp.eq.s32.totalorder %v2697_v22, %v2688_v18  ;;  %vm422_vm14 = vcmp.eq.s32.totalorder %v2700_v23, %v2688_v18  ;;  %vm423_vm15 = vcmp.eq.s32.totalorder %v2703_v24, %v2688_v18 }
  0xbb   :  { %v1985_v7 = vsel %vm420_vm12, 1.0, %v2507_v29  ;;  %v1986_v8 = vsel %vm421_vm13, 1.0, %v2507_v29  ;;  %v1987_v9 = vsel %vm422_vm14, 1.0, %v2507_v29  ;;  %v1988_v10 = vsel %vm423_vm15, 1.0, %v2507_v29 }
  0xc2   :  { %v2738_v35 = vpop.permute.xlu2 %458 }
  0xc3   :  { %vm460_vm0 = vcmp.eq.s32.totalorder %v2686_v17, %v2738_v35  ;;  %vm461_vm1 = vcmp.eq.s32.totalorder %v2697_v22, %v2738_v35  ;;  %vm462_vm2 = vcmp.eq.s32.totalorder %v2700_v23, %v2738_v35  ;;  %vm463_vm3 = vcmp.eq.s32.totalorder %v2703_v24, %v2738_v35 }
  0xc4   :  { %v1993_v15 = vsel %vm460_vm0, 1.0, %v2507_v29  ;;  %v1994_v16 = vsel %vm461_vm1, 1.0, %v2507_v29  ;;  %v1995_v18 = vsel %vm462_vm2, 1.0, %v2507_v29  ;;  %v1996_v19 = vsel %vm463_vm3, 1.0, %v2507_v29 }
  0xc5   :  { %v319_v25 = vpop.permute.xlu0 %318  ;;  %vm669_vm0 = vcmask 261120  }
  0xc6   :  { %vm320_vm4 = vcmp.eq.s32.totalorder %v2686_v17, %v319_v25  ;;  %vm321_vm5 = vcmp.eq.s32.totalorder %v2697_v22, %v319_v25  ;;  %vm322_vm6 = vcmp.eq.s32.totalorder %v2700_v23, %v319_v25  ;;  %vm323_vm7 = vcmp.eq.s32.totalorder %v2703_v24, %v319_v25 }
  0xc7   :  { %v359_v27 = vpop.permute.xlu1 %358  ;;  %v1965_v37 = vsel %vm320_vm4, 1.0, %v2507_v29  ;;  %v1966_v38 = vsel %vm321_vm5, 1.0, %v2507_v29  ;;  %v1967_v39 = vsel %vm322_vm6, 1.0, %v2507_v29  ;;  %v1968_v40 = vsel %vm323_vm7, 1.0, %v2507_v29 }
  0xc8   :  { %vm360_vm8 = vcmp.eq.s32.totalorder %v2686_v17, %v359_v27  ;;  %vm361_vm9 = vcmp.eq.s32.totalorder %v2697_v22, %v359_v27  ;;  %vm362_vm10 = vcmp.eq.s32.totalorder %v2700_v23, %v359_v27  ;;  %vm363_vm11 = vcmp.eq.s32.totalorder %v2703_v24, %v359_v27 }
  0xc9   :  { %v1973_v42 = vsel %vm360_vm8, 1.0, %v2507_v29  ;;  %v1974_v43 = vsel %vm361_vm9, 1.0, %v2507_v29  ;;  %v1975_v44 = vsel %vm362_vm10, 1.0, %v2507_v29  ;;  %v1976_v45 = vsel %vm363_vm11, 1.0, %v2507_v29 }
  0xce   :  { %v339_v46 = vpop.permute.xlu0 %338 }
  0xcf   :  { %vm340_vm4 = vcmp.eq.s32.totalorder %v2686_v17, %v339_v46  ;;  %vm341_vm5 = vcmp.eq.s32.totalorder %v2697_v22, %v339_v46  ;;  %vm342_vm6 = vcmp.eq.s32.totalorder %v2700_v23, %v339_v46  ;;  %vm343_vm7 = vcmp.eq.s32.totalorder %v2703_v24, %v339_v46 }
  0xd0   :  { %v1969_v48 = vsel %vm340_vm4, 1.0, %v2507_v29  ;;  %v1970_v49 = vsel %vm341_vm5, 1.0, %v2507_v29  ;;  %v1971_v50 = vsel %vm342_vm6, 1.0, %v2507_v29  ;;  %v1972_v51 = vsel %vm343_vm7, 1.0, %v2507_v29  ;;  %v379_v52 = vpop.permute.xlu1 %378 }
  0xd1   :  { %v352_v53 = vadd.f32 %v1969_v48, %v1965_v37  ;;  %v353_v54 = vadd.f32 %v1970_v49, %v1966_v38  ;;  %v354_v55 = vadd.f32 %v1971_v50, %v1967_v39  ;;  %v355_v56 = vadd.f32 %v1972_v51, %v1968_v40  ;;  %v622_v39 = vld [vmem:[%s2963_s22 + $0x10] sm:$0xff]  ;;  %v621_v40 = vld [vmem:[%s2963_s22 + $0x8] sm:$0xff] }
  0xd2   :  { %vm380_vm8 = vcmp.eq.s32.totalorder %v2686_v17, %v379_v52  ;;  %vm381_vm9 = vcmp.eq.s32.totalorder %v2697_v22, %v379_v52  ;;  %vm382_vm10 = vcmp.eq.s32.totalorder %v2700_v23, %v379_v52  ;;  %vm383_vm11 = vcmp.eq.s32.totalorder %v2703_v24, %v379_v52  ;;  %v662_v51 = vld [vmem:[#allocation7 + $0x8] sm:$0xff]  ;;  %v661_v52 = vld [vmem:[#allocation7] sm:$0xff] }
  0xd3   :  { %v372_v58 = vadd.f32 %v1973_v42, %v352_v53  ;;  %v373_v59 = vadd.f32 %v1974_v43, %v353_v54  ;;  %v374_v60 = vadd.f32 %v1975_v44, %v354_v55  ;;  %v375_v61 = vadd.f32 %v1976_v45, %v355_v56  ;;  %v664_v42 = vld [vmem:[#allocation7 + $0x18] sm:$0xff]  ;;  %v663_v43 = vld [vmem:[#allocation7 + $0x10] sm:$0xff] }
  0xd4   :  { %v1977_v63 = vsel %vm380_vm8, 1.0, %v2507_v29  ;;  %v1978_v0 = vsel %vm381_vm9, 1.0, %v2507_v29  ;;  %v1979_v1 = vsel %vm382_vm10, 1.0, %v2507_v29  ;;  %v1980_v2 = vsel %vm383_vm11, 1.0, %v2507_v29  ;;  %685 = vmatpush.msrb.mxu1 %v664_v42  ;;  %v697_v53 = vld [vmem:[#allocation10 + $0x18] sm:$0xff]  ;;  %v696_v54 = vld [vmem:[#allocation10 + $0x10] sm:$0xff] }
  0xd5   :  { %v392_v3 = vadd.f32 %v1977_v63, %v372_v58  ;;  %v393_v4 = vadd.f32 %v1978_v0, %v373_v59  ;;  %v394_v5 = vadd.f32 %v1979_v1, %v374_v60  ;;  %v395_v6 = vadd.f32 %v1980_v2, %v375_v61  ;;  %717 = vmatpush.msrb.mxu2 %v697_v53  ;;  %v2041_v55 = vld [vmem:[#allocation6] ss:$0 sm:$0xff]  ;;  %v695_v59 = vld [vmem:[#allocation10 + $0x8] sm:$0xff]  ;;  %v694_v60 = vld [vmem:[#allocation10] sm:$0xff] }
  0xd6   :  { %686 = vmatpush.msrb.mxu1 %v663_v43  ;;  %v789_v61 = vld [vmem:[#allocation13 + $0x168] sm:$0xff]  ;;  %v786_v63 = vld [vmem:[#allocation13 + $0x150] sm:$0xff]  ;;  %v787_v0 = vld [vmem:[#allocation13 + $0x158] sm:$0xff] }
  0xd7   :  { %v412_v11 = vadd.f32 %v2720_v30, %v392_v3  ;;  %v413_v12 = vadd.f32 %v2723_v31, %v393_v4  ;;  %v414_v13 = vadd.f32 %v2726_v32, %v394_v5  ;;  %v415_v14 = vadd.f32 %v2729_v33, %v395_v6  ;;  %718 = vmatpush.msrb.mxu2 %v696_v54  ;;  %v783_v1 = vld [vmem:[#allocation13 + $0x138] sm:$0xff]  ;;  %v784_v2 = vld [vmem:[#allocation13 + $0x140] sm:$0xff]  ;;  %v781_v4 = vld [vmem:[#allocation13 + $0x128] sm:$0xff] }
  0xd8   :  { %687 = vmatpush.msrb.mxu1 %v662_v51  ;;  %792 = vmatpush.msrb.mxu3 %v789_v61  ;;  %v780_v3 = vld [vmem:[#allocation13 + $0x120] sm:$0xff]  ;;  %v777_v5 = vld [vmem:[#allocation13 + $0x108] sm:$0xff]  ;;  %v778_v6 = vld [vmem:[#allocation13 + $0x110] sm:$0xff] }
  0xd9   :  { %v439_v20 = vpop.permute.xlu1 %438  ;;  %v432_v21 = vadd.f32 %v1985_v7, %v412_v11  ;;  %v433_v25 = vadd.f32 %v1986_v8, %v413_v12  ;;  %v434_v26 = vadd.f32 %v1987_v9, %v414_v13  ;;  %v435_v27 = vadd.f32 %v1988_v10, %v415_v14  ;;  %719 = vmatpush.msrb.mxu2 %v695_v59  ;;  %v774_v7 = vld [vmem:[#allocation13 + $0xf0] sm:$0xff]  ;;  %v775_v8 = vld [vmem:[#allocation13 + $0xf8] sm:$0xff]  ;;  %v772_v10 = vld [vmem:[#allocation13 + $0xe0] sm:$0xff] }
  0xda   :  { %vm440_vm12 = vcmp.eq.s32.totalorder %v2686_v17, %v439_v20  ;;  %vm441_vm13 = vcmp.eq.s32.totalorder %v2697_v22, %v439_v20  ;;  %vm442_vm14 = vcmp.eq.s32.totalorder %v2700_v23, %v439_v20  ;;  %vm443_vm15 = vcmp.eq.s32.totalorder %v2703_v24, %v439_v20  ;;  %v625_v23 = vld [vmem:[%s2963_s22 + $0x28] sm:$0xff]  ;;  %v624_v24 = vld [vmem:[%s2963_s22 + $0x20] sm:$0xff]  ;;  %688 = vmatpush.msrb.mxu1 %v661_v52  ;;  %v769_v12 = vld [vmem:[#allocation13 + $0xc8] sm:$0xff] }
  0xdb   :  { %v1989_v28 = vsel %vm440_vm12, 1.0, %v2507_v29  ;;  %v1990_v30 = vsel %vm441_vm13, 1.0, %v2507_v29  ;;  %v1991_v31 = vsel %vm442_vm14, 1.0, %v2507_v29  ;;  %v1992_v32 = vsel %vm443_vm15, 1.0, %v2507_v29  ;;  %650 = vmatpush.msrb.mxu0 %v625_v23  ;;  %v623_v29 = vld [vmem:[%s2963_s22 + $0x18] sm:$0xff]  ;;  %720 = vmatpush.msrb.mxu2 %v694_v60  ;;  %v771_v9 = vld [vmem:[#allocation13 + $0xd8] sm:$0xff] }
  0xdc   :  { %v452_v33 = vadd.f32 %v1989_v28, %v432_v21  ;;  %v453_v34 = vadd.f32 %v1990_v30, %v433_v25  ;;  %v454_v35 = vadd.f32 %v1991_v31, %v434_v26  ;;  %v455_v36 = vadd.f32 %v1992_v32, %v435_v27  ;;  %793 = vmatpush.msrb.mxu3 %v786_v63  ;;  %v768_v11 = vld [vmem:[#allocation13 + $0xc0] sm:$0xff]  ;;  %v765_v13 = vld [vmem:[#allocation13 + $0xa8] sm:$0xff]  ;;  %v766_v14 = vld [vmem:[#allocation13 + $0xb0] sm:$0xff] }
  0xdd   :  { %651 = vmatpush.msrb.mxu0 %v624_v24  ;;  %v756_v20 = vld [vmem:[#allocation13 + $0x60] sm:$0xff]  ;;  %v757_v21 = vld [vmem:[#allocation13 + $0x68] sm:$0xff]  ;;  %v2042_v25 = vld [vmem:[#allocation9] ss:$0 sm:$0xff] }
  0xde   :  { %v472_v37 = vadd.f32 %v1993_v15, %v452_v33  ;;  %v473_v17 = vadd.f32 %v1994_v16, %v453_v34  ;;  %v474_v38 = vadd.f32 %v1995_v18, %v454_v35  ;;  %v475_v22 = vadd.f32 %v1996_v19, %v455_v36  ;;  %794 = vmatpush.msrb.mxu3 %v783_v1  ;;  %v762_v15 = vld [vmem:[#allocation13 + $0x90] sm:$0xff]  ;;  %v763_v16 = vld [vmem:[#allocation13 + $0x98] sm:$0xff]  ;;  %v760_v19 = vld [vmem:[#allocation13 + $0x80] sm:$0xff] }
  0xdf   :  { %652 = vmatpush.msrb.mxu0 %v623_v29  ;;  %v759_v18 = vld [vmem:[#allocation13 + $0x78] sm:$0xff]  ;;  %v897_v31 = vld [vmem:[#allocation15 + $0x168] sm:$0xff]  ;;  %v754_v33 = vld [vmem:[#allocation13 + $0x50] sm:$0xff] }
  0xe0   :  { %556 = vmatmul.f32.vlgmr.msra.gmra.mxu0 %v472_v37  ;;  %576 = vmatmul.f32.vlgmr.msra.gmra.mxu1 %v473_v17  ;;  %v791_v30 = vld [vmem:[#allocation13 + $0x178] sm:$0xff]  ;;  %v753_v32 = vld [vmem:[#allocation13 + $0x48] sm:$0xff]  ;;  %v788_v34 = vld [vmem:[#allocation13 + $0x160] sm:$0xff] }
  0xe1   :  { %596 = vmatmul.f32.vlgmr.msra.gmra.mxu2 %v474_v38  ;;  %616 = vmatmul.f32.vlgmr.msra.gmra.mxu3 %v475_v22  ;;  %v894_v35 = vld [vmem:[#allocation15 + $0x150] sm:$0xff]  ;;  %v751_v37 = vld [vmem:[#allocation13 + $0x38] sm:$0xff]  ;;  %v785_v17 = vld [vmem:[#allocation13 + $0x148] sm:$0xff] }
  0xe2   :  { %653 = vmatpush.msrb.mxu0 %v622_v39  ;;  %812 = vmatpush.msra.mxu1 %v790_v62  ;;  %v750_v36 = vld [vmem:[#allocation13 + $0x30] sm:$0xff]  ;;  %v891_v38 = vld [vmem:[#allocation15 + $0x138] sm:$0xff]  ;;  %v748_v23 = vld [vmem:[#allocation13 + $0x20] sm:$0xff] }
  0xe3   :  { %795 = vmatpush.msrb.mxu3 %v780_v3  ;;  %832 = vmatpush.msra.mxu2 %v791_v30  ;;  %v747_v22 = vld [vmem:[#allocation13 + $0x18] sm:$0xff]  ;;  %v782_v24 = vld [vmem:[#allocation13 + $0x130] sm:$0xff]  ;;  %v888_v29 = vld [vmem:[#allocation15 + $0x120] sm:$0xff] }
  0xe4   :  { %654 = vmatpush.msrb.mxu0 %v621_v40  ;;  %813 = vmatpush.msra.mxu1 %v787_v0  ;;  %v744_v39 = vld [vmem:[#allocation13] sm:$0xff]  ;;  %v745_v40 = vld [vmem:[#allocation13 + $0x8] sm:$0xff]  ;;  %v898_v43 = vld [vmem:[#allocation15 + $0x170] sm:$0xff] }
  0xe5   :  { %796 = vmatpush.msrb.mxu3 %v777_v5  ;;  %833 = vmatpush.msra.mxu2 %v788_v34  ;;  %v885_v42 = vld [vmem:[#allocation15 + $0x108] sm:$0xff]  ;;  %v879_v51 = vld [vmem:[#allocation15 + $0xd8] sm:$0xff]  ;;  %v892_v52 = vld [vmem:[#allocation15 + $0x140] sm:$0xff] }
  0xe6   :  { %655 = vmatpush.msrb.mxu0 %v620_v41  ;;  %814 = vmatpush.msra.mxu1 %v784_v2  ;;  %v779_v41 = vld [vmem:[#allocation13 + $0x118] sm:$0xff]  ;;  %v893_v53 = vld [vmem:[#allocation15 + $0x148] sm:$0xff]  ;;  %v770_v54 = vld [vmem:[#allocation13 + $0xd0] sm:$0xff] }
  0xe7   :  { %797 = vmatpush.msrb.mxu3 %v774_v7  ;;  %834 = vmatpush.msra.mxu2 %v785_v17  ;;  %v873_v59 = vld [vmem:[#allocation15 + $0xa8] sm:$0xff]  ;;  %v886_v60 = vld [vmem:[#allocation15 + $0x110] sm:$0xff]  ;;  %v887_v61 = vld [vmem:[#allocation15 + $0x118] sm:$0xff] }
  0xe8   :  { %815 = vmatpush.msra.mxu1 %v781_v4  ;;  %900 = vmatpush.msra.mxu0 %v897_v31  ;;  %v764_v62 = vld [vmem:[#allocation13 + $0xa0] sm:$0xff]  ;;  %v870_v63 = vld [vmem:[#allocation15 + $0x90] sm:$0xff]  ;;  %v883_v0 = vld [vmem:[#allocation15 + $0xf8] sm:$0xff] }
  0xe9   :  { %798 = vmatpush.msrb.mxu3 %v771_v9  ;;  %835 = vmatpush.msra.mxu2 %v782_v24  ;;  %v884_v1 = vld [vmem:[#allocation15 + $0x100] sm:$0xff]  ;;  %v761_v2 = vld [vmem:[#allocation13 + $0x88] sm:$0xff]  ;;  %v867_v3 = vld [vmem:[#allocation15 + $0x78] sm:$0xff] }
  0xea   :  { %816 = vmatpush.msra.mxu1 %v778_v6  ;;  %901 = vmatpush.msra.mxu0 %v894_v35  ;;  %v880_v4 = vld [vmem:[#allocation15 + $0xe0] sm:$0xff]  ;;  %v881_v5 = vld [vmem:[#allocation15 + $0xe8] sm:$0xff]  ;;  %v758_v6 = vld [vmem:[#allocation13 + $0x70] sm:$0xff] }
  0xeb   :  { %799 = vmatpush.msrb.mxu3 %v768_v11  ;;  %836 = vmatpush.msra.mxu2 %v779_v41  ;;  %v864_v7 = vld [vmem:[#allocation15 + $0x60] sm:$0xff]  ;;  %v878_v9 = vld [vmem:[#allocation15 + $0xd0] sm:$0xff]  ;;  %v861_v11 = vld [vmem:[#allocation15 + $0x48] sm:$0xff] }
  0xec   :  { %817 = vmatpush.msra.mxu1 %v775_v8  ;;  %902 = vmatpush.msra.mxu0 %v891_v38  ;;  %v877_v8 = vld [vmem:[#allocation15 + $0xc8] sm:$0xff]  ;;  %v866_v31 = vld [vmem:[#allocation15 + $0x70] sm:$0xff]  ;;  %v863_v34 = vld [vmem:[#allocation15 + $0x58] sm:$0xff] }
  0xed   :  { %800 = vmatpush.msrb.mxu3 %v765_v13  ;;  %v875_v13 = vld [vmem:[#allocation15 + $0xb8] sm:$0xff]  ;;  %v865_v30 = vld [vmem:[#allocation15 + $0x68] sm:$0xff]  ;;  %v856_v38 = vld [vmem:[#allocation15 + $0x20] sm:$0xff] }
  0xee   :  { %818 = vmatpush.msra.mxu1 %v772_v10  ;;  %903 = vmatpush.msra.mxu0 %v888_v29  ;;  %v755_v10 = vld [vmem:[#allocation13 + $0x58] sm:$0xff]  ;;  %v854_v24 = vld [vmem:[#allocation15 + $0x10] sm:$0xff]  ;;  %v1014_v29 = vld [vmem:[#allocation16 + $0x168] sm:$0xff] }
  0xef   :  { %801 = vmatpush.msrb.mxu3 %v762_v15  ;;  %v858_v15 = vld [vmem:[#allocation15 + $0x30] sm:$0xff] }
  0xf0   :  { %819 = vmatpush.msra.mxu1 %v769_v12  ;;  %904 = vmatpush.msra.mxu0 %v885_v42  ;;  %v874_v12 = vld [vmem:[#allocation15 + $0xb0] sm:$0xff] }
  0xf1   :  { %802 = vmatpush.msrb.mxu3 %v759_v18  ;;  %v872_v18 = vld [vmem:[#allocation15 + $0xa0] sm:$0xff] }
  0xf2   :  { %820 = vmatpush.msra.mxu1 %v766_v14  ;;  %v752_v14 = vld [vmem:[#allocation13 + $0x40] sm:$0xff] }
  0xf3   :  { %803 = vmatpush.msrb.mxu3 %v756_v20  ;;  %v855_v20 = vld [vmem:[#allocation15 + $0x18] sm:$0xff] }
  0xf4   :  { %821 = vmatpush.msra.mxu1 %v763_v16  ;;  %v871_v16 = vld [vmem:[#allocation15 + $0x98] sm:$0xff] }
  0xf5   :  { %804 = vmatpush.msrb.mxu3 %v753_v32 }
  0xf6   :  { %822 = vmatpush.msra.mxu1 %v760_v19  ;;  %v749_v19 = vld [vmem:[#allocation13 + $0x28] sm:$0xff] }
  0xf7   :  { %805 = vmatpush.msrb.mxu3 %v750_v36  ;;  %v859_v36 = vld [vmem:[#allocation15 + $0x38] sm:$0xff] }
  0xf8   :  { %823 = vmatpush.msra.mxu1 %v757_v21  ;;  %v868_v21 = vld [vmem:[#allocation15 + $0x80] sm:$0xff] }
  0xf9   :  { %806 = vmatpush.msrb.mxu3 %v747_v22  ;;  %v857_v22 = vld [vmem:[#allocation15 + $0x28] sm:$0xff] }
  0xfa   :  { %824 = vmatpush.msra.mxu1 %v754_v33  ;;  %v862_v33 = vld [vmem:[#allocation15 + $0x50] sm:$0xff] }
  0xfb   :  { %807 = vmatpush.msrb.mxu3 %v744_v39  ;;  %v1011_v39 = vld [vmem:[#allocation16 + $0x150] sm:$0xff] }
  0xfc   :  { %825 = vmatpush.msra.mxu1 %v751_v37  ;;  %v860_v37 = vld [vmem:[#allocation15 + $0x40] sm:$0xff] }
  0xfd   :  { %920 = vmatpush.msra.mxu3 %v898_v43  ;;  %v1005_v43 = vld [vmem:[#allocation16 + $0x120] sm:$0xff] }
  0xfe   :  { %826 = vmatpush.msra.mxu1 %v748_v23  ;;  %v853_v23 = vld [vmem:[#allocation15 + $0x8] sm:$0xff] }
 0x100   :  { %827 = vmatpush.msra.mxu1 %v745_v40  ;;  %v1008_v40 = vld [vmem:[#allocation16 + $0x138] sm:$0xff] }
 0x15d   :  { %v557_v44 = vpop.f32.mrf.mxu0  ;;  %v577_v45 = vpop.f32.mrf.mxu1 }
 0x15e   :  { %v578_v46 = vadd.f32 %v577_v45, %v557_v44  ;;  %v899_v44 = vld [vmem:[#allocation15 + $0x178] sm:$0xff]  ;;  %v776_v45 = vld [vmem:[#allocation13 + $0x100] sm:$0xff] }
 0x15f   :  { %837 = vmatpush.msra.mxu2 %v776_v45  ;;  %v1059_v45 = vld [vmem:[#allocation16 + $0x2d0] sm:$0xff] }
 0x164   :  { %v597_v47 = vpop.f32.mrf.mxu2  ;;  %v617_v49 = vpop.f32.mrf.mxu3 }
 0x165   :  { %v598_v48 = vadd.f32 %v597_v47, %v578_v46  ;;  %v882_v46 = vld [vmem:[#allocation15 + $0xf0] sm:$0xff]  ;;  %v895_v47 = vld [vmem:[#allocation15 + $0x158] sm:$0xff] }
 0x166   :  { %905 = vmatpush.msra.mxu0 %v882_v46  ;;  %921 = vmatpush.msra.mxu3 %v895_v47  ;;  %v1002_v46 = vld [vmem:[#allocation16 + $0x108] sm:$0xff]  ;;  %v1056_v47 = vld [vmem:[#allocation16 + $0x2b8] sm:$0xff] }
 0x167   :  { %v2877_v50 = vadd.f32 %v617_v49, %v598_v48  ;;  %v896_v48 = vld [vmem:[#allocation15 + $0x160] sm:$0xff]  ;;  %v773_v49 = vld [vmem:[#allocation13 + $0xe8] sm:$0xff] }
 0x168   :  { %838 = vmatpush.msra.mxu2 %v773_v49  ;;  %906 = vmatpush.msra.mxu0 %v879_v51  ;;  %v1053_v49 = vld [vmem:[#allocation16 + $0x2a0] sm:$0xff]  ;;  %v996_v51 = vld [vmem:[#allocation16 + $0xd8] sm:$0xff] }
 0x169   :  { %656 = vmatmul.f32.vlgmr.msrb.gmra.mxu0 %v2877_v50  ;;  %922 = vmatpush.msra.mxu3 %v892_v52  ;;  %v1050_v52 = vld [vmem:[#allocation16 + $0x288] sm:$0xff] }
 0x16a   :  { %839 = vmatpush.msra.mxu2 %v770_v54  ;;  %v993_v54 = vld [vmem:[#allocation16 + $0xc0] sm:$0xff] }
 0x1e6   :  { %v657_v56 = vpop.f32.mrf.mxu0 }
 0x1e7   :  { %v658_v57 = vadd.f32 %v2041_v55, %v657_v56  ;;  %v876_v55 = vld [vmem:[#allocation15 + $0xc0] sm:$0xff]  ;;  %v889_v56 = vld [vmem:[#allocation15 + $0x128] sm:$0xff] }
 0x1e8   :  { %907 = vmatpush.msra.mxu0 %v876_v55  ;;  %923 = vmatpush.msra.mxu3 %v889_v56  ;;  %v1047_v55 = vld [vmem:[#allocation16 + $0x270] sm:$0xff] }
 0x1e9   :  { %v660_v58 = vmax.f32 %v658_v57, 0.0  ;;  %v890_v57 = vld [vmem:[#allocation15 + $0x130] sm:$0xff] }
 0x1ea   :  { %908 = vmatpush.msra.mxu0 %v873_v59  ;;  %924 = vmatpush.msra.mxu3 %v886_v60 }
 0x1eb   :  { %1997 = vmatmul.msk.f32.vlgmr.msrb.gmra.mxu1 %vm669_vm0, %v660_v58  ;;  %v767_v58 = vld [vmem:[#allocation13 + $0xb8] sm:$0xff] }
 0x1ec   :  { %940 = vmatpush.msrb.mxu1 %v899_v44  ;;  %840 = vmatpush.msra.mxu2 %v767_v58  ;;  %v1062_v44 = vld [vmem:[#allocation16 + $0x2e8] sm:$0xff]  ;;  %v1044_v58 = vld [vmem:[#allocation16 + $0x258] sm:$0xff] }
 0x1ed   :  { %909 = vmatpush.msra.mxu0 %v870_v63  ;;  %925 = vmatpush.msra.mxu3 %v883_v0 }
 0x1ee   :  { %941 = vmatpush.msrb.mxu1 %v896_v48  ;;  %841 = vmatpush.msra.mxu2 %v764_v62  ;;  %v999_v48 = vld [vmem:[#allocation16 + $0xf0] sm:$0xff]  ;;  %v1041_v62 = vld [vmem:[#allocation16 + $0x240] sm:$0xff] }
 0x1ef   :  { %910 = vmatpush.msra.mxu0 %v867_v3  ;;  %926 = vmatpush.msra.mxu3 %v880_v4 }
 0x1f0   :  { %942 = vmatpush.msrb.mxu1 %v893_v53  ;;  %842 = vmatpush.msra.mxu2 %v761_v2  ;;  %v1038_v2 = vld [vmem:[#allocation16 + $0x228] sm:$0xff] }
 0x1f1   :  { %911 = vmatpush.msra.mxu0 %v864_v7  ;;  %927 = vmatpush.msra.mxu3 %v877_v8  ;;  %v1015_v7 = vld [vmem:[#allocation16 + $0x170] sm:$0xff]  ;;  %v1110_v8 = vld [vmem:[#allocation16 + $0x468] sm:$0xff] }
 0x1f2   :  { %943 = vmatpush.msrb.mxu1 %v890_v57  ;;  %843 = vmatpush.msra.mxu2 %v758_v6  ;;  %v990_v57 = vld [vmem:[#allocation16 + $0xa8] sm:$0xff] }
 0x1f3   :  { %912 = vmatpush.msra.mxu0 %v861_v11  ;;  %928 = vmatpush.msra.mxu3 %v874_v12  ;;  %v1012_v11 = vld [vmem:[#allocation16 + $0x158] sm:$0xff]  ;;  %v1107_v12 = vld [vmem:[#allocation16 + $0x450] sm:$0xff] }
 0x1f4   :  { %944 = vmatpush.msrb.mxu1 %v887_v61  ;;  %844 = vmatpush.msra.mxu2 %v755_v10  ;;  %v987_v61 = vld [vmem:[#allocation16 + $0x90] sm:$0xff] }
 0x1f5   :  { %913 = vmatpush.msra.mxu0 %v858_v15  ;;  %929 = vmatpush.msra.mxu3 %v871_v16  ;;  %v1035_v10 = vld [vmem:[#allocation16 + $0x210] sm:$0xff]  ;;  %v1009_v15 = vld [vmem:[#allocation16 + $0x140] sm:$0xff]  ;;  %v1104_v16 = vld [vmem:[#allocation16 + $0x438] sm:$0xff] }
 0x1f6   :  { %945 = vmatpush.msrb.mxu1 %v884_v1  ;;  %845 = vmatpush.msra.mxu2 %v752_v14  ;;  %v984_v1 = vld [vmem:[#allocation16 + $0x78] sm:$0xff] }
 0x1f7   :  { %914 = vmatpush.msra.mxu0 %v855_v20  ;;  %930 = vmatpush.msra.mxu3 %v868_v21  ;;  %v1032_v14 = vld [vmem:[#allocation16 + $0x1f8] sm:$0xff]  ;;  %v1006_v20 = vld [vmem:[#allocation16 + $0x128] sm:$0xff]  ;;  %v1101_v21 = vld [vmem:[#allocation16 + $0x420] sm:$0xff] }
 0x1f8   :  { %946 = vmatpush.msrb.mxu1 %v881_v5  ;;  %846 = vmatpush.msra.mxu2 %v749_v19  ;;  %v1029_v19 = vld [vmem:[#allocation16 + $0x1e0] sm:$0xff] }
 0x1f9   :  { %931 = vmatpush.msra.mxu3 %v865_v30  ;;  %v969_v30 = vld [vmem:[#allocation16] sm:$0xff] }
 0x1fa   :  { %947 = vmatpush.msrb.mxu1 %v878_v9  ;;  %v981_v9 = vld [vmem:[#allocation16 + $0x60] sm:$0xff] }
 0x1fb   :  { %932 = vmatpush.msra.mxu3 %v862_v33  ;;  %v1095_v33 = vld [vmem:[#allocation16 + $0x3f0] sm:$0xff] }
 0x1fc   :  { %948 = vmatpush.msrb.mxu1 %v875_v13  ;;  %v978_v13 = vld [vmem:[#allocation16 + $0x48] sm:$0xff] }
 0x1fd   :  { %933 = vmatpush.msra.mxu3 %v859_v36  ;;  %v997_v36 = vld [vmem:[#allocation16 + $0xe0] sm:$0xff] }
 0x1fe   :  { %949 = vmatpush.msrb.mxu1 %v872_v18  ;;  %v975_v18 = vld [vmem:[#allocation16 + $0x30] sm:$0xff] }
 0x1ff   :  { %934 = vmatpush.msra.mxu3 %v856_v38  ;;  %v1017_v38 = vld [vmem:[#allocation16 + $0x180] sm:$0xff] }
 0x201   :  { %935 = vmatpush.msra.mxu3 %v853_v23  ;;  %v1089_v23 = vld [vmem:[#allocation16 + $0x3c0] sm:$0xff] }
 0x268   :  { %v690_v26 = vpop.f32.mrf.mxu1 }
 0x269   :  { %v691_v27 = vadd.f32 %v2042_v25, %v690_v26  ;;  %v869_v25 = vld [vmem:[#allocation15 + $0x88] sm:$0xff]  ;;  %v746_v26 = vld [vmem:[#allocation13 + $0x10] sm:$0xff] }
 0x26a   :  { %950 = vmatpush.msrb.mxu1 %v869_v25  ;;  %847 = vmatpush.msra.mxu2 %v746_v26  ;;  %v972_v25 = vld [vmem:[#allocation16 + $0x18] sm:$0xff]  ;;  %v1026_v26 = vld [vmem:[#allocation16 + $0x1c8] sm:$0xff] }
 0x26b   :  { %v693_v28 = vmax.f32 %v691_v27, 0.0  ;;  %v852_v27 = vld [vmem:[#allocation15] sm:$0xff] }
 0x26c   :  { %915 = vmatpush.msra.mxu0 %v852_v27  ;;  %951 = vmatpush.msrb.mxu1 %v866_v31  ;;  %v1003_v27 = vld [vmem:[#allocation16 + $0x110] sm:$0xff] }
 0x26d   :  { %1998 = vmatmul.msk.f32.vlgmr.msrb.gmra.mxu2 %vm669_vm0, %v693_v28  ;;  %v2043_v28 = vld [vmem:[#allocation12] ss:$0 sm:$0xff]  ;;  %v1023_v31 = vld [vmem:[#allocation16 + $0x1b0] sm:$0xff] }
 0x26e   :  { %952 = vmatpush.msrb.mxu1 %v863_v34  ;;  %1113 = vmatpush.msrb.mxu2 %v1014_v29  ;;  %v1063_v34 = vld [vmem:[#allocation16 + $0x2f0] sm:$0xff] }
 0x26f   :  { %1133 = vmatpush.msrb.mxu0 %v1062_v44  ;;  %v1111_v29 = vld [vmem:[#allocation16 + $0x470] sm:$0xff] }
 0x270   :  { %953 = vmatpush.msrb.mxu1 %v860_v37  ;;  %1114 = vmatpush.msrb.mxu2 %v1011_v39  ;;  %v1092_v37 = vld [vmem:[#allocation16 + $0x3d8] sm:$0xff]  ;;  %v991_v39 = vld [vmem:[#allocation16 + $0xb0] sm:$0xff] }
 0x271   :  { %1134 = vmatpush.msrb.mxu0 %v1059_v45  ;;  %v1051_v44 = vld [vmem:[#allocation16 + $0x290] sm:$0xff]  ;;  %v985_v45 = vld [vmem:[#allocation16 + $0x80] sm:$0xff] }
 0x272   :  { %954 = vmatpush.msrb.mxu1 %v857_v22  ;;  %1115 = vmatpush.msrb.mxu2 %v1008_v40  ;;  %v994_v22 = vld [vmem:[#allocation16 + $0xc8] sm:$0xff] }
 0x273   :  { %1135 = vmatpush.msrb.mxu0 %v1056_v47  ;;  %v1086_v40 = vld [vmem:[#allocation16 + $0x3a8] sm:$0xff]  ;;  %v1048_v47 = vld [vmem:[#allocation16 + $0x278] sm:$0xff] }
 0x274   :  { %955 = vmatpush.msrb.mxu1 %v854_v24  ;;  %1116 = vmatpush.msrb.mxu2 %v1005_v43  ;;  %v1057_v24 = vld [vmem:[#allocation16 + $0x2c0] sm:$0xff]  ;;  %v1083_v43 = vld [vmem:[#allocation16 + $0x390] sm:$0xff] }
 0x275   :  { %1136 = vmatpush.msrb.mxu0 %v1053_v49  ;;  %v1077_v49 = vld [vmem:[#allocation16 + $0x360] sm:$0xff] }
 0x276   :  { %1117 = vmatpush.msrb.mxu2 %v1002_v46  ;;  %v1080_v46 = vld [vmem:[#allocation16 + $0x378] sm:$0xff] }
 0x277   :  { %1137 = vmatpush.msrb.mxu0 %v1050_v52  ;;  %v979_v52 = vld [vmem:[#allocation16 + $0x50] sm:$0xff] }
 0x278   :  { %1118 = vmatpush.msrb.mxu2 %v999_v48  ;;  %v982_v48 = vld [vmem:[#allocation16 + $0x68] sm:$0xff] }
 0x279   :  { %1138 = vmatpush.msrb.mxu0 %v1047_v55  ;;  %v976_v55 = vld [vmem:[#allocation16 + $0x38] sm:$0xff] }
 0x27a   :  { %1119 = vmatpush.msrb.mxu2 %v996_v51  ;;  %v1045_v51 = vld [vmem:[#allocation16 + $0x260] sm:$0xff] }
 0x27b   :  { %1139 = vmatpush.msrb.mxu0 %v1044_v58  ;;  %v973_v58 = vld [vmem:[#allocation16 + $0x20] sm:$0xff] }
 0x27c   :  { %1120 = vmatpush.msrb.mxu2 %v993_v54  ;;  %v1042_v54 = vld [vmem:[#allocation16 + $0x248] sm:$0xff] }
 0x27d   :  { %1140 = vmatpush.msrb.mxu0 %v1041_v62  ;;  %v1064_v62 = vld [vmem:[#allocation16 + $0x2f8] sm:$0xff] }
 0x27e   :  { %1121 = vmatpush.msrb.mxu2 %v990_v57  ;;  %v1039_v57 = vld [vmem:[#allocation16 + $0x230] sm:$0xff] }
 0x27f   :  { %1141 = vmatpush.msrb.mxu0 %v1038_v2  ;;  %v1058_v2 = vld [vmem:[#allocation16 + $0x2c8] sm:$0xff] }
 0x280   :  { %1122 = vmatpush.msrb.mxu2 %v987_v61  ;;  %v1065_v61 = vld [vmem:[#allocation16 + $0x300] sm:$0xff] }
 0x281   :  { %1142 = vmatpush.msrb.mxu0 %v1035_v10  ;;  %v1049_v10 = vld [vmem:[#allocation16 + $0x280] sm:$0xff] }
 0x282   :  { %1123 = vmatpush.msrb.mxu2 %v984_v1  ;;  %v1013_v1 = vld [vmem:[#allocation16 + $0x160] sm:$0xff] }
 0x283   :  { %1143 = vmatpush.msrb.mxu0 %v1032_v14  ;;  %v1046_v14 = vld [vmem:[#allocation16 + $0x268] sm:$0xff] }
 0x284   :  { %1124 = vmatpush.msrb.mxu2 %v981_v9  ;;  %v1004_v9 = vld [vmem:[#allocation16 + $0x118] sm:$0xff] }
 0x285   :  { %1144 = vmatpush.msrb.mxu0 %v1029_v19  ;;  %v1043_v19 = vld [vmem:[#allocation16 + $0x250] sm:$0xff] }
 0x286   :  { %1125 = vmatpush.msrb.mxu2 %v978_v13  ;;  %v1001_v13 = vld [vmem:[#allocation16 + $0x100] sm:$0xff] }
 0x287   :  { %1145 = vmatpush.msrb.mxu0 %v1026_v26  ;;  %v1040_v26 = vld [vmem:[#allocation16 + $0x238] sm:$0xff] }
 0x288   :  { %1126 = vmatpush.msrb.mxu2 %v975_v18  ;;  %v998_v18 = vld [vmem:[#allocation16 + $0xe8] sm:$0xff] }
 0x289   :  { %1146 = vmatpush.msrb.mxu0 %v1023_v31  ;;  %v1037_v31 = vld [vmem:[#allocation16 + $0x220] sm:$0xff] }
 0x28a   :  { %1127 = vmatpush.msrb.mxu2 %v972_v25  ;;  %v995_v25 = vld [vmem:[#allocation16 + $0xd0] sm:$0xff] }
 0x28c   :  { %1128 = vmatpush.msrb.mxu2 %v969_v30  ;;  %v992_v30 = vld [vmem:[#allocation16 + $0xb8] sm:$0xff] }
 0x2f0   :  { %v722_v32 = vpop.f32.mrf.mxu2 }
 0x2f1   :  { %v723_v35 = vadd.f32 %v2043_v28, %v722_v32  ;;  %v1098_v28 = vld [vmem:[#allocation16 + $0x408] sm:$0xff]  ;;  %v1000_v32 = vld [vmem:[#allocation16 + $0xf8] sm:$0xff] }
 0x2f3   :  { %v1999_v17 = vmul.f32 -1.442695, %v723_v35  ;;  %v1020_v35 = vld [vmem:[#allocation16 + $0x198] sm:$0xff] }
 0x2f4   :  { %1147 = vmatpush.msrb.mxu0 %v1020_v35  ;;  %v1034_v35 = vld [vmem:[#allocation16 + $0x208] sm:$0xff] }
 0x2f5   :  { %2046 = vpow2.f32 %v1999_v17  ;;  %v1060_v17 = vld [vmem:[#allocation16 + $0x2d8] sm:$0xff] }
 0x2f6   :  { %1148 = vmatpush.msrb.mxu0 %v1017_v38  ;;  %v1031_v38 = vld [vmem:[#allocation16 + $0x1f0] sm:$0xff] }
 0x2fb   :  { %v2047_v41 = vpop.eup %2046 }
 0x2fc   :  { %v728_v42 = vadd.f32 1.0, %v2047_v41  ;;  %v1054_v41 = vld [vmem:[#allocation16 + $0x2a8] sm:$0xff] }
 0x2fe   :  { %2048 = vrcp.f32 %v728_v42  ;;  %v740_v60 = vand.u32 2147483648, %v728_v42  ;;  %v738_v0 = vand.u32 2147483647, %v728_v42  ;;  %vm734_vm2 = vweird.f32 %v728_v42 }
 0x300   :  { %v741_v4 = vor.u32 1.1754944e-38, %v740_v60  ;;  %vm739_vm4 = vcmp.eq.f32.partialorder %v738_v0, 8.507059e+37  ;;  %v970_v60 = vld [vmem:[#allocation16 + $0x8] sm:$0xff]  ;;  %v1061_v0 = vld [vmem:[#allocation16 + $0x2e0] sm:$0xff] }
 0x304   :  { %v2049_v53 = vpop.eup %2048 }
 0x305   :  { %v730_v56 = vmul.f32 %v2049_v53, %v728_v42  ;;  %vm735_vm1 = vweird.f32 %v2049_v53  ;;  %v988_v42 = vld [vmem:[#allocation16 + $0x98] sm:$0xff] }
 0x306   :  { %vm736_vm3 = vmor %vm734_vm2, %vm735_vm1 }
 0x307   :  { %v731_v59 = vsub.f32 1.0, %v730_v56  ;;  %v1071_v56 = vld [vmem:[#allocation16 + $0x330] sm:$0xff] }
 0x309   :  { %v732_v63 = vmul.f32 %v2049_v53, %v731_v59  ;;  %v1068_v59 = vld [vmem:[#allocation16 + $0x318] sm:$0xff] }
 0x30b   :  { %v733_v3 = vadd.f32 %v2049_v53, %v732_v63  ;;  %v1016_v63 = vld [vmem:[#allocation16 + $0x178] sm:$0xff] }
 0x30d   :  { %v737_v5 = vsel %vm736_vm3, %v2049_v53, %v733_v3  ;;  %v1074_v53 = vld [vmem:[#allocation16 + $0x348] sm:$0xff] }
 0x30e   :  { %v742_v6 = vsel %vm739_vm4, %v741_v4, %v737_v5  ;;  %v1010_v3 = vld [vmem:[#allocation16 + $0x148] sm:$0xff]  ;;  %v1055_v4 = vld [vmem:[#allocation16 + $0x2b0] sm:$0xff] }
 0x30f   :  { %808 = vmatmul.f32.vlgmr.msrb.gmra.mxu3 %v742_v6  ;;  %828 = vmatmul.f32.vlgmr.msra.gmra.mxu1 %v742_v6  ;;  %v1007_v5 = vld [vmem:[#allocation16 + $0x130] sm:$0xff] }
 0x310   :  { %848 = vmatmul.f32.vlgmr.msra.gmra.mxu2 %v742_v6  ;;  %916 = vmatmul.f32.vlgmr.msra.gmra.mxu0 %v742_v6 }
 0x311   :  { %1173 = vmatpush.msra.mxu1 %v1015_v7  ;;  %1153 = vmatpush.msrb.mxu3 %v1110_v8  ;;  %v1036_v7 = vld [vmem:[#allocation16 + $0x218] sm:$0xff] }
 0x312   :  { %1193 = vmatpush.msra.mxu2 %v1063_v34  ;;  %1213 = vmatpush.msra.mxu0 %v1111_v29  ;;  %v1108_v8 = vld [vmem:[#allocation16 + $0x458] sm:$0xff]  ;;  %v989_v34 = vld [vmem:[#allocation16 + $0xa0] sm:$0xff] }
 0x313   :  { %1174 = vmatpush.msra.mxu1 %v1012_v11  ;;  %1154 = vmatpush.msrb.mxu3 %v1107_v12  ;;  %v1033_v11 = vld [vmem:[#allocation16 + $0x200] sm:$0xff]  ;;  %v1084_v29 = vld [vmem:[#allocation16 + $0x398] sm:$0xff] }
 0x314   :  { %1194 = vmatpush.msra.mxu2 %v1060_v17  ;;  %1214 = vmatpush.msra.mxu0 %v1108_v8  ;;  %v1105_v12 = vld [vmem:[#allocation16 + $0x440] sm:$0xff]  ;;  %v986_v17 = vld [vmem:[#allocation16 + $0x88] sm:$0xff] }
 0x315   :  { %1175 = vmatpush.msra.mxu1 %v1009_v15  ;;  %1155 = vmatpush.msrb.mxu3 %v1104_v16  ;;  %v1030_v15 = vld [vmem:[#allocation16 + $0x1e8] sm:$0xff] }
 0x316   :  { %1195 = vmatpush.msra.mxu2 %v1057_v24  ;;  %1215 = vmatpush.msra.mxu0 %v1105_v12  ;;  %v1102_v16 = vld [vmem:[#allocation16 + $0x428] sm:$0xff]  ;;  %v1028_v24 = vld [vmem:[#allocation16 + $0x1d8] sm:$0xff]  ;;  %v1401_v12 = vld [vmem:[#allocation16 + $0x750] sm:$0xff] }
 0x317   :  { %936 = vmatmul.f32.vlgmr.msra.gmra.mxu3 %v742_v6  ;;  %956 = vmatmul.f32.vlgmr.msrb.gmra.mxu1 %v742_v6  ;;  %v1052_v6 = vld [vmem:[#allocation16 + $0x298] sm:$0xff] }
 0x318   :  { %1176 = vmatpush.msra.mxu1 %v1006_v20  ;;  %1156 = vmatpush.msrb.mxu3 %v1101_v21  ;;  %v1027_v20 = vld [vmem:[#allocation16 + $0x1d0] sm:$0xff] }
 0x319   :  { %1196 = vmatpush.msra.mxu2 %v1054_v41  ;;  %1216 = vmatpush.msra.mxu0 %v1102_v16  ;;  %v1099_v21 = vld [vmem:[#allocation16 + $0x410] sm:$0xff]  ;;  %v1081_v41 = vld [vmem:[#allocation16 + $0x380] sm:$0xff] }
 0x31a   :  { %1177 = vmatpush.msra.mxu1 %v1003_v27  ;;  %1157 = vmatpush.msrb.mxu3 %v1098_v28  ;;  %v1024_v27 = vld [vmem:[#allocation16 + $0x1b8] sm:$0xff]  ;;  %v1091_v16 = vld [vmem:[#allocation16 + $0x3d0] sm:$0xff] }
 0x31b   :  { %1197 = vmatpush.msra.mxu2 %v1051_v44  ;;  %1217 = vmatpush.msra.mxu0 %v1099_v21  ;;  %v1096_v28 = vld [vmem:[#allocation16 + $0x3f8] sm:$0xff]  ;;  %v1078_v44 = vld [vmem:[#allocation16 + $0x368] sm:$0xff] }
 0x31c   :  { %1178 = vmatpush.msra.mxu1 %v1000_v32  ;;  %1158 = vmatpush.msrb.mxu3 %v1095_v33  ;;  %v1021_v32 = vld [vmem:[#allocation16 + $0x1a0] sm:$0xff]  ;;  %v1392_v21 = vld [vmem:[#allocation16 + $0x708] sm:$0xff] }
 0x31d   :  { %1198 = vmatpush.msra.mxu2 %v1048_v47  ;;  %1218 = vmatpush.msra.mxu0 %v1096_v28  ;;  %v1093_v33 = vld [vmem:[#allocation16 + $0x3e0] sm:$0xff]  ;;  %v1075_v47 = vld [vmem:[#allocation16 + $0x350] sm:$0xff]  ;;  %v1082_v28 = vld [vmem:[#allocation16 + $0x388] sm:$0xff] }
 0x31e   :  { %1179 = vmatpush.msra.mxu1 %v997_v36  ;;  %1159 = vmatpush.msrb.mxu3 %v1092_v37  ;;  %v1018_v36 = vld [vmem:[#allocation16 + $0x188] sm:$0xff] }
 0x31f   :  { %1199 = vmatpush.msra.mxu2 %v1045_v51  ;;  %1219 = vmatpush.msra.mxu0 %v1093_v33  ;;  %v1090_v37 = vld [vmem:[#allocation16 + $0x3c8] sm:$0xff]  ;;  %v1069_v51 = vld [vmem:[#allocation16 + $0x320] sm:$0xff]  ;;  %v1338_v33 = vld [vmem:[#allocation16 + $0x558] sm:$0xff] }
 0x320   :  { %1180 = vmatpush.msra.mxu1 %v994_v22  ;;  %1160 = vmatpush.msrb.mxu3 %v1089_v23  ;;  %v1087_v22 = vld [vmem:[#allocation16 + $0x3b0] sm:$0xff] }
 0x321   :  { %1200 = vmatpush.msra.mxu2 %v1042_v54  ;;  %1220 = vmatpush.msra.mxu0 %v1090_v37  ;;  %v983_v23 = vld [vmem:[#allocation16 + $0x70] sm:$0xff]  ;;  %v1380_v37 = vld [vmem:[#allocation16 + $0x6a8] sm:$0xff] }
 0x322   :  { %1181 = vmatpush.msra.mxu1 %v991_v39  ;;  %1161 = vmatpush.msrb.mxu3 %v1086_v40  ;;  %v980_v39 = vld [vmem:[#allocation16 + $0x58] sm:$0xff]  ;;  %v1025_v40 = vld [vmem:[#allocation16 + $0x1c0] sm:$0xff] }
 0x323   :  { %1201 = vmatpush.msra.mxu2 %v1039_v57  ;;  %1221 = vmatpush.msra.mxu0 %v1087_v22  ;;  %v1377_v22 = vld [vmem:[#allocation16 + $0x690] sm:$0xff] }
 0x324   :  { %1182 = vmatpush.msra.mxu1 %v988_v42  ;;  %1162 = vmatpush.msrb.mxu3 %v1083_v43  ;;  %v977_v42 = vld [vmem:[#allocation16 + $0x40] sm:$0xff]  ;;  %v1022_v43 = vld [vmem:[#allocation16 + $0x1a8] sm:$0xff] }
 0x325   :  { %1202 = vmatpush.msra.mxu2 %v1036_v7  ;;  %1222 = vmatpush.msra.mxu0 %v1084_v29  ;;  %v1404_v7 = vld [vmem:[#allocation16 + $0x768] sm:$0xff]  ;;  %v1374_v29 = vld [vmem:[#allocation16 + $0x678] sm:$0xff] }
 0x326   :  { %1183 = vmatpush.msra.mxu1 %v985_v45  ;;  %1163 = vmatpush.msrb.mxu3 %v1080_v46  ;;  %v974_v45 = vld [vmem:[#allocation16 + $0x28] sm:$0xff]  ;;  %v1019_v46 = vld [vmem:[#allocation16 + $0x190] sm:$0xff] }
 0x327   :  { %1203 = vmatpush.msra.mxu2 %v1033_v11  ;;  %1223 = vmatpush.msra.mxu0 %v1081_v41  ;;  %v1097_v11 = vld [vmem:[#allocation16 + $0x400] sm:$0xff]  ;;  %v1326_v41 = vld [vmem:[#allocation16 + $0x4f8] sm:$0xff] }
 0x328   :  { %1184 = vmatpush.msra.mxu1 %v982_v48  ;;  %1164 = vmatpush.msrb.mxu3 %v1077_v49  ;;  %v971_v48 = vld [vmem:[#allocation16 + $0x10] sm:$0xff]  ;;  %v1072_v49 = vld [vmem:[#allocation16 + $0x338] sm:$0xff] }
 0x329   :  { %1204 = vmatpush.msra.mxu2 %v1030_v15  ;;  %1224 = vmatpush.msra.mxu0 %v1078_v44  ;;  %v1350_v15 = vld [vmem:[#allocation16 + $0x5b8] sm:$0xff]  ;;  %v1357_v44 = vld [vmem:[#allocation16 + $0x5f0] sm:$0xff] }
 0x32a   :  { %1185 = vmatpush.msra.mxu1 %v979_v52  ;;  %1165 = vmatpush.msrb.mxu3 %v1074_v53  ;;  %v1066_v52 = vld [vmem:[#allocation16 + $0x308] sm:$0xff] }
 0x32b   :  { %1205 = vmatpush.msra.mxu2 %v1027_v20  ;;  %1225 = vmatpush.msra.mxu0 %v1075_v47  ;;  %v1347_v20 = vld [vmem:[#allocation16 + $0x5a0] sm:$0xff]  ;;  %v1446_v47 = vld [vmem:[#allocation16 + $0x8b8] sm:$0xff] }
 0x32c   :  { %1186 = vmatpush.msra.mxu1 %v976_v55  ;;  %1166 = vmatpush.msrb.mxu3 %v1071_v56 }
 0x32d   :  { %1206 = vmatpush.msra.mxu2 %v1024_v27  ;;  %1226 = vmatpush.msra.mxu0 %v1072_v49  ;;  %v1389_v27 = vld [vmem:[#allocation16 + $0x6f0] sm:$0xff]  ;;  %v1320_v49 = vld [vmem:[#allocation16 + $0x4c8] sm:$0xff] }
 0x32e   :  { %1187 = vmatpush.msra.mxu1 %v973_v58  ;;  %1167 = vmatpush.msrb.mxu3 %v1068_v59 }
 0x32f   :  { %1207 = vmatpush.msra.mxu2 %v1021_v32  ;;  %1227 = vmatpush.msra.mxu0 %v1069_v51  ;;  %v1079_v32 = vld [vmem:[#allocation16 + $0x370] sm:$0xff] }
 0x330   :  { %1188 = vmatpush.msra.mxu1 %v970_v60  ;;  %1168 = vmatpush.msrb.mxu3 %v1065_v61  ;;  %v1365_v51 = vld [vmem:[#allocation16 + $0x630] sm:$0xff] }
 0x331   :  { %1208 = vmatpush.msra.mxu2 %v1018_v36  ;;  %1228 = vmatpush.msra.mxu0 %v1066_v52  ;;  %v1335_v36 = vld [vmem:[#allocation16 + $0x540] sm:$0xff] }
 0x332   :  { %1253 = vmatpush.msrb.mxu1 %v1064_v62  ;;  %1233 = vmatpush.msra.mxu3 %v1016_v63  ;;  %v1112_v63 = vld [vmem:[#allocation16 + $0x478] sm:$0xff]  ;;  %v1443_v52 = vld [vmem:[#allocation16 + $0x8a0] sm:$0xff] }
 0x334   :  { %1254 = vmatpush.msrb.mxu1 %v1061_v0  ;;  %1234 = vmatpush.msra.mxu3 %v1013_v1  ;;  %v1109_v1 = vld [vmem:[#allocation16 + $0x460] sm:$0xff] }
 0x336   :  { %1255 = vmatpush.msrb.mxu1 %v1058_v2  ;;  %1235 = vmatpush.msra.mxu3 %v1010_v3 }
 0x338   :  { %1256 = vmatpush.msrb.mxu1 %v1055_v4  ;;  %1236 = vmatpush.msra.mxu3 %v1007_v5  ;;  %v1106_v4 = vld [vmem:[#allocation16 + $0x448] sm:$0xff] }
 0x33a   :  { %1257 = vmatpush.msrb.mxu1 %v1052_v6  ;;  %1237 = vmatpush.msra.mxu3 %v1004_v9  ;;  %v1103_v6 = vld [vmem:[#allocation16 + $0x430] sm:$0xff]  ;;  %v1100_v9 = vld [vmem:[#allocation16 + $0x418] sm:$0xff] }
 0x33c   :  { %1258 = vmatpush.msrb.mxu1 %v1049_v10  ;;  %1238 = vmatpush.msra.mxu3 %v1001_v13  ;;  %v1356_v10 = vld [vmem:[#allocation16 + $0x5e8] sm:$0xff]  ;;  %v1353_v13 = vld [vmem:[#allocation16 + $0x5d0] sm:$0xff] }
 0x33e   :  { %1259 = vmatpush.msrb.mxu1 %v1046_v14  ;;  %1239 = vmatpush.msra.mxu3 %v998_v18  ;;  %v1094_v14 = vld [vmem:[#allocation16 + $0x3e8] sm:$0xff]  ;;  %v1395_v18 = vld [vmem:[#allocation16 + $0x720] sm:$0xff] }
 0x340   :  { %1260 = vmatpush.msrb.mxu1 %v1043_v19  ;;  %1240 = vmatpush.msra.mxu3 %v995_v25  ;;  %v1088_v19 = vld [vmem:[#allocation16 + $0x3b8] sm:$0xff]  ;;  %v1085_v25 = vld [vmem:[#allocation16 + $0x3a0] sm:$0xff] }
 0x342   :  { %1261 = vmatpush.msrb.mxu1 %v1040_v26  ;;  %1241 = vmatpush.msra.mxu3 %v992_v30  ;;  %v1344_v26 = vld [vmem:[#allocation16 + $0x588] sm:$0xff]  ;;  %v1341_v30 = vld [vmem:[#allocation16 + $0x570] sm:$0xff] }
 0x344   :  { %1262 = vmatpush.msrb.mxu1 %v1037_v31  ;;  %1242 = vmatpush.msra.mxu3 %v989_v34  ;;  %v1386_v31 = vld [vmem:[#allocation16 + $0x6d8] sm:$0xff]  ;;  %v1383_v34 = vld [vmem:[#allocation16 + $0x6c0] sm:$0xff] }
 0x346   :  { %1263 = vmatpush.msrb.mxu1 %v1034_v35  ;;  %1243 = vmatpush.msra.mxu3 %v986_v17  ;;  %v1076_v35 = vld [vmem:[#allocation16 + $0x358] sm:$0xff]  ;;  %v1073_v17 = vld [vmem:[#allocation16 + $0x340] sm:$0xff] }
 0x348   :  { %1264 = vmatpush.msrb.mxu1 %v1031_v38  ;;  %1244 = vmatpush.msra.mxu3 %v983_v23  ;;  %v1332_v38 = vld [vmem:[#allocation16 + $0x528] sm:$0xff] }
 0x349   :  { %v1070_v23 = vld [vmem:[#allocation16 + $0x328] sm:$0xff] }
 0x34a   :  { %1265 = vmatpush.msrb.mxu1 %v1028_v24  ;;  %1245 = vmatpush.msra.mxu3 %v980_v39  ;;  %v1329_v24 = vld [vmem:[#allocation16 + $0x510] sm:$0xff]  ;;  %v1452_v39 = vld [vmem:[#allocation16 + $0x8e8] sm:$0xff] }
 0x34c   :  { %1266 = vmatpush.msrb.mxu1 %v1025_v40  ;;  %1246 = vmatpush.msra.mxu3 %v977_v42  ;;  %v1067_v40 = vld [vmem:[#allocation16 + $0x310] sm:$0xff]  ;;  %v1371_v42 = vld [vmem:[#allocation16 + $0x660] sm:$0xff] }
 0x34e   :  { %1267 = vmatpush.msrb.mxu1 %v1022_v43  ;;  %1247 = vmatpush.msra.mxu3 %v974_v45  ;;  %v1449_v43 = vld [vmem:[#allocation16 + $0x8d0] sm:$0xff]  ;;  %v1323_v45 = vld [vmem:[#allocation16 + $0x4e0] sm:$0xff] }
 0x350   :  { %1268 = vmatpush.msrb.mxu1 %v1019_v46  ;;  %1248 = vmatpush.msra.mxu3 %v971_v48  ;;  %v1368_v46 = vld [vmem:[#allocation16 + $0x648] sm:$0xff]  ;;  %v1354_v48 = vld [vmem:[#allocation16 + $0x5d8] sm:$0xff] }
 0x38c   :  { %v829_v53 = vpop.f32.mrf.mxu1 }
 0x38d   :  { %v917_v54 = vpop.f32.mrf.mxu0 }
 0x392   :  { %v809_v55 = vpop.f32.mrf.mxu3 }
 0x393   :  { %v960_v56 = vmul.f32 %v917_v54, %v809_v55  ;;  %v849_v57 = vpop.f32.mrf.mxu2  ;;  %v1317_v54 = vld [vmem:[#allocation16 + $0x4b0] sm:$0xff]  ;;  %v1362_v55 = vld [vmem:[#allocation16 + $0x618] sm:$0xff] }
 0x394   :  { %v957_v58 = vpop.f32.mrf.mxu1 }
 0x395   :  { %v963_v59 = vmul.f32 2.0, %v960_v56  ;;  %v962_v60 = vmul.f32 %v957_v58, %v849_v57  ;;  %v1440_v56 = vld [vmem:[#allocation16 + $0x888] sm:$0xff]  ;;  %v1314_v58 = vld [vmem:[#allocation16 + $0x498] sm:$0xff] }
 0x396   :  { %v1348_v57 = vld [vmem:[#allocation16 + $0x5a8] sm:$0xff] }
 0x397   :  { %v2883_v61 = vmul.f32 %v963_v59, %v2877_v50  ;;  %v965_v62 = vmul.f32 2.0, %v962_v60  ;;  %v1359_v59 = vld [vmem:[#allocation16 + $0x600] sm:$0xff]  ;;  %v1437_v60 = vld [vmem:[#allocation16 + $0x870] sm:$0xff] }
 0x399   :  { %v2886_v0 = vmul.f32 %v965_v62, %v2877_v50  ;;  %1129 = vmatmul.f32.vlgmr.msrb.gmra.mxu2 %v2883_v61  ;;  %1189 = vmatmul.f32.vlgmr.msra.gmra.mxu1 %v2883_v61  ;;  %v1345_v62 = vld [vmem:[#allocation16 + $0x590] sm:$0xff] }
 0x39a   :  { %1273 = vmatpush.msrb.mxu2 %v1112_v63  ;;  %v937_v2 = vpop.f32.mrf.mxu3  ;;  %1495 = vmatpush.msra.mxu1 %v1452_v39  ;;  %v1311_v63 = vld [vmem:[#allocation16 + $0x480] sm:$0xff]  ;;  %v1438_v39 = vld [vmem:[#allocation16 + $0x878] sm:$0xff] }
 0x39b   :  { %v961_v3 = vmul.f32 %v937_v2, %v829_v53  ;;  %1169 = vmatmul.f32.vlgmr.msrb.gmra.mxu3 %v2886_v0  ;;  %v1351_v53 = vld [vmem:[#allocation16 + $0x5c0] sm:$0xff]  ;;  %v1453_v2 = vld [vmem:[#allocation16 + $0x8f0] sm:$0xff] }
 0x39c   :  { %1274 = vmatpush.msrb.mxu2 %v1109_v1  ;;  %1475 = vmatpush.msrb.mxu3 %v1404_v7  ;;  %v1405_v1 = vld [vmem:[#allocation16 + $0x770] sm:$0xff]  ;;  %v1339_v7 = vld [vmem:[#allocation16 + $0x560] sm:$0xff] }
 0x39d   :  { %v964_v5 = vmul.f32 2.0, %v961_v3  ;;  %1496 = vmatpush.msra.mxu1 %v1449_v43  ;;  %v1342_v3 = vld [vmem:[#allocation16 + $0x578] sm:$0xff]  ;;  %v1435_v43 = vld [vmem:[#allocation16 + $0x860] sm:$0xff] }
 0x39e   :  { %1275 = vmatpush.msrb.mxu2 %v1106_v4  ;;  %1476 = vmatpush.msrb.mxu3 %v1401_v12  ;;  %v1434_v4 = vld [vmem:[#allocation16 + $0x858] sm:$0xff]  ;;  %v1336_v12 = vld [vmem:[#allocation16 + $0x548] sm:$0xff] }
 0x39f   :  { %v2892_v8 = vmul.f32 %v964_v5, %v2877_v50  ;;  %v1398_v50 = vld [vmem:[#allocation16 + $0x738] sm:$0xff]  ;;  %1497 = vmatpush.msra.mxu1 %v1446_v47  ;;  %v1432_v47 = vld [vmem:[#allocation16 + $0x848] sm:$0xff] }
 0x3a0   :  { %1276 = vmatpush.msrb.mxu2 %v1103_v6  ;;  %1477 = vmatpush.msrb.mxu3 %v1398_v50  ;;  %v1402_v5 = vld [vmem:[#allocation16 + $0x758] sm:$0xff]  ;;  %v1393_v50 = vld [vmem:[#allocation16 + $0x710] sm:$0xff] }
 0x3a1   :  { %1149 = vmatmul.f32.vlgmr.msrb.gmra.mxu0 %v2892_v8  ;;  %1209 = vmatmul.f32.vlgmr.msra.gmra.mxu2 %v2892_v8  ;;  %v1450_v6 = vld [vmem:[#allocation16 + $0x8d8] sm:$0xff] }
 0x3a2   :  { %1269 = vmatmul.f32.vlgmr.msrb.gmra.mxu1 %v2892_v8  ;;  %1277 = vmatpush.msrb.mxu2 %v1100_v9  ;;  %v1431_v9 = vld [vmem:[#allocation16 + $0x840] sm:$0xff] }
 0x3a3   :  { %1249 = vmatmul.f32.vlgmr.msra.gmra.mxu3 %v2883_v61  ;;  %1455 = vmatpush.msrb.mxu0 %v1356_v10  ;;  %v1399_v10 = vld [vmem:[#allocation16 + $0x740] sm:$0xff] }
 0x3a4   :  { %1278 = vmatpush.msrb.mxu2 %v1097_v11  ;;  %1478 = vmatpush.msrb.mxu3 %v1395_v18  ;;  %v1447_v11 = vld [vmem:[#allocation16 + $0x8c0] sm:$0xff] }
 0x3a5   :  { %1456 = vmatpush.msrb.mxu0 %v1353_v13  ;;  %1498 = vmatpush.msra.mxu1 %v1443_v52  ;;  %v1396_v13 = vld [vmem:[#allocation16 + $0x728] sm:$0xff]  ;;  %v1327_v18 = vld [vmem:[#allocation16 + $0x500] sm:$0xff]  ;;  %v1429_v52 = vld [vmem:[#allocation16 + $0x830] sm:$0xff] }
 0x3a6   :  { %1279 = vmatpush.msrb.mxu2 %v1094_v14  ;;  %1479 = vmatpush.msrb.mxu3 %v1392_v21  ;;  %v1333_v14 = vld [vmem:[#allocation16 + $0x530] sm:$0xff]  ;;  %v1318_v21 = vld [vmem:[#allocation16 + $0x4b8] sm:$0xff] }
 0x3a7   :  { %1457 = vmatpush.msrb.mxu0 %v1350_v15  ;;  %1499 = vmatpush.msra.mxu1 %v1440_v56  ;;  %v1330_v15 = vld [vmem:[#allocation16 + $0x518] sm:$0xff] }
 0x3a8   :  { %1280 = vmatpush.msrb.mxu2 %v1091_v16  ;;  %1480 = vmatpush.msrb.mxu3 %v1389_v27  ;;  %v1390_v16 = vld [vmem:[#allocation16 + $0x6f8] sm:$0xff] }
 0x3a9   :  { %1229 = vmatmul.f32.vlgmr.msra.gmra.mxu0 %v2886_v0  ;;  %1500 = vmatpush.msra.mxu1 %v1437_v60  ;;  %v1406_v27 = vld [vmem:[#allocation16 + $0x778] sm:$0xff]  ;;  %v1423_v60 = vld [vmem:[#allocation16 + $0x800] sm:$0xff] }
 0x3aa   :  { %1281 = vmatpush.msrb.mxu2 %v1088_v19  ;;  %1458 = vmatpush.msrb.mxu0 %v1347_v20  ;;  %v1324_v19 = vld [vmem:[#allocation16 + $0x4e8] sm:$0xff]  ;;  %v1321_v20 = vld [vmem:[#allocation16 + $0x4d0] sm:$0xff]  ;;  %v1426_v56 = vld [vmem:[#allocation16 + $0x818] sm:$0xff] }
 0x3ab   :  { %1481 = vmatpush.msrb.mxu3 %v1386_v31  ;;  %1501 = vmatpush.msra.mxu1 %v1434_v4  ;;  %v1397_v31 = vld [vmem:[#allocation16 + $0x730] sm:$0xff]  ;;  %v1355_v4 = vld [vmem:[#allocation16 + $0x5e0] sm:$0xff] }
 0x3ac   :  { %1282 = vmatpush.msrb.mxu2 %v1085_v25  ;;  %1459 = vmatpush.msrb.mxu0 %v1344_v26  ;;  %v1315_v25 = vld [vmem:[#allocation16 + $0x4a0] sm:$0xff]  ;;  %v1312_v26 = vld [vmem:[#allocation16 + $0x488] sm:$0xff] }
 0x3ad   :  { %1482 = vmatpush.msrb.mxu3 %v1383_v34  ;;  %1502 = vmatpush.msra.mxu1 %v1431_v9  ;;  %v1428_v34 = vld [vmem:[#allocation16 + $0x828] sm:$0xff] }
 0x3ae   :  { %1283 = vmatpush.msrb.mxu2 %v1082_v28  ;;  %1460 = vmatpush.msrb.mxu0 %v1341_v30  ;;  %v1403_v28 = vld [vmem:[#allocation16 + $0x760] sm:$0xff]  ;;  %v1400_v30 = vld [vmem:[#allocation16 + $0x748] sm:$0xff] }
 0x3af   :  { %1483 = vmatpush.msrb.mxu3 %v1380_v37  ;;  %1503 = vmatpush.msra.mxu1 %v1428_v34  ;;  %v1388_v37 = vld [vmem:[#allocation16 + $0x6e8] sm:$0xff] }
 0x3b0   :  { %1284 = vmatpush.msrb.mxu2 %v1079_v32  ;;  %1461 = vmatpush.msrb.mxu0 %v1338_v33  ;;  %v1394_v32 = vld [vmem:[#allocation16 + $0x718] sm:$0xff]  ;;  %v1391_v33 = vld [vmem:[#allocation16 + $0x700] sm:$0xff]  ;;  %v1352_v9 = vld [vmem:[#allocation16 + $0x5c8] sm:$0xff] }
 0x3b1   :  { %1484 = vmatpush.msrb.mxu3 %v1377_v22  ;;  %v1441_v22 = vld [vmem:[#allocation16 + $0x890] sm:$0xff] }
 0x3b2   :  { %1285 = vmatpush.msrb.mxu2 %v1076_v35  ;;  %1462 = vmatpush.msrb.mxu0 %v1335_v36  ;;  %v1387_v35 = vld [vmem:[#allocation16 + $0x6e0] sm:$0xff]  ;;  %v1444_v36 = vld [vmem:[#allocation16 + $0x8a8] sm:$0xff] }
 0x3b3   :  { %1485 = vmatpush.msrb.mxu3 %v1374_v29  ;;  %v1381_v29 = vld [vmem:[#allocation16 + $0x6b0] sm:$0xff] }
 0x3b4   :  { %1286 = vmatpush.msrb.mxu2 %v1073_v17  ;;  %1463 = vmatpush.msrb.mxu0 %v1332_v38  ;;  %v1425_v17 = vld [vmem:[#allocation16 + $0x810] sm:$0xff]  ;;  %v1384_v38 = vld [vmem:[#allocation16 + $0x6c8] sm:$0xff] }
 0x3b5   :  { %1486 = vmatpush.msrb.mxu3 %v1371_v42  ;;  %1504 = vmatpush.msra.mxu1 %v1425_v17  ;;  %v1378_v42 = vld [vmem:[#allocation16 + $0x698] sm:$0xff] }
 0x3b6   :  { %1287 = vmatpush.msrb.mxu2 %v1070_v23  ;;  %1464 = vmatpush.msrb.mxu0 %v1329_v24  ;;  %v1385_v23 = vld [vmem:[#allocation16 + $0x6d0] sm:$0xff]  ;;  %v1422_v24 = vld [vmem:[#allocation16 + $0x7f8] sm:$0xff] }
 0x3b7   :  { %1487 = vmatpush.msrb.mxu3 %v1368_v46  ;;  %1505 = vmatpush.msra.mxu1 %v1422_v24  ;;  %v1375_v46 = vld [vmem:[#allocation16 + $0x680] sm:$0xff] }
 0x3b8   :  { %1288 = vmatpush.msrb.mxu2 %v1067_v40  ;;  %1465 = vmatpush.msrb.mxu0 %v1326_v41  ;;  %v1382_v40 = vld [vmem:[#allocation16 + $0x6b8] sm:$0xff]  ;;  %v1419_v41 = vld [vmem:[#allocation16 + $0x7e0] sm:$0xff] }
 0x3b9   :  { %1289 = vmatmul.f32.vlgmr.msrb.gmra.mxu2 %v2886_v0  ;;  %1488 = vmatpush.msrb.mxu3 %v1365_v51  ;;  %v1372_v51 = vld [vmem:[#allocation16 + $0x668] sm:$0xff] }
 0x3ba   :  { %1515 = vmatpush.msra.mxu2 %v1357_v44  ;;  %1466 = vmatpush.msrb.mxu0 %v1323_v45  ;;  %v1379_v44 = vld [vmem:[#allocation16 + $0x6a0] sm:$0xff]  ;;  %v1416_v45 = vld [vmem:[#allocation16 + $0x7c8] sm:$0xff] }
 0x3bb   :  { %1489 = vmatpush.msrb.mxu3 %v1362_v55  ;;  %1506 = vmatpush.msra.mxu1 %v1419_v41  ;;  %v1369_v55 = vld [vmem:[#allocation16 + $0x650] sm:$0xff]  ;;  %v1454_v41 = vld [vmem:[#allocation16 + $0x8f8] sm:$0xff] }
 0x3bc   :  { %1516 = vmatpush.msra.mxu2 %v1354_v48  ;;  %1467 = vmatpush.msrb.mxu0 %v1320_v49  ;;  %v1376_v48 = vld [vmem:[#allocation16 + $0x688] sm:$0xff]  ;;  %v1413_v49 = vld [vmem:[#allocation16 + $0x7b0] sm:$0xff] }
 0x3bd   :  { %1490 = vmatpush.msrb.mxu3 %v1359_v59  ;;  %1507 = vmatpush.msra.mxu1 %v1416_v45  ;;  %v1366_v59 = vld [vmem:[#allocation16 + $0x638] sm:$0xff] }
 0x3be   :  { %1517 = vmatpush.msra.mxu2 %v1351_v53  ;;  %1468 = vmatpush.msrb.mxu0 %v1317_v54  ;;  %v1373_v53 = vld [vmem:[#allocation16 + $0x670] sm:$0xff]  ;;  %v1410_v54 = vld [vmem:[#allocation16 + $0x798] sm:$0xff] }
 0x3bf   :  { %1555 = vmatpush.msra.mxu3 %v1453_v2  ;;  %1508 = vmatpush.msra.mxu1 %v1413_v49  ;;  %v1420_v2 = vld [vmem:[#allocation16 + $0x7e8] sm:$0xff]  ;;  %v1699_v45 = vld [vmem:[#allocation19 + $0x170] sm:$0xff] }
 0x3c0   :  { %1518 = vmatpush.msra.mxu2 %v1348_v57  ;;  %1469 = vmatpush.msrb.mxu0 %v1314_v58  ;;  %v1370_v57 = vld [vmem:[#allocation16 + $0x658] sm:$0xff]  ;;  %v1407_v58 = vld [vmem:[#allocation16 + $0x780] sm:$0xff] }
 0x3c1   :  { %1556 = vmatpush.msra.mxu3 %v1450_v6  ;;  %1509 = vmatpush.msra.mxu1 %v1410_v54  ;;  %v1417_v6 = vld [vmem:[#allocation16 + $0x7d0] sm:$0xff]  ;;  %v1442_v54 = vld [vmem:[#allocation16 + $0x898] sm:$0xff] }
 0x3c2   :  { %1519 = vmatpush.msra.mxu2 %v1345_v62  ;;  %1470 = vmatpush.msrb.mxu0 %v1311_v63  ;;  %v1367_v62 = vld [vmem:[#allocation16 + $0x640] sm:$0xff]  ;;  %v1358_v63 = vld [vmem:[#allocation16 + $0x5f8] sm:$0xff] }
 0x3c3   :  { %1557 = vmatpush.msra.mxu3 %v1447_v11  ;;  %1510 = vmatpush.msra.mxu1 %v1407_v58  ;;  %v1349_v11 = vld [vmem:[#allocation16 + $0x5b0] sm:$0xff] }
 0x3c4   :  { %1535 = vmatpush.msra.mxu0 %v1405_v1  ;;  %1520 = vmatpush.msra.mxu2 %v1342_v3  ;;  %v1363_v1 = vld [vmem:[#allocation16 + $0x620] sm:$0xff]  ;;  %v1364_v3 = vld [vmem:[#allocation16 + $0x628] sm:$0xff] }
 0x3c5   :  { %1558 = vmatpush.msra.mxu3 %v1444_v36  ;;  %1575 = vmatpush.msrb.mxu1 %v1358_v63  ;;  %v1666_v58 = vld [vmem:[#allocation19 + $0x68] sm:$0xff] }
 0x3c6   :  { %1536 = vmatpush.msra.mxu0 %v1402_v5  ;;  %1521 = vmatpush.msra.mxu2 %v1339_v7  ;;  %v1360_v5 = vld [vmem:[#allocation16 + $0x608] sm:$0xff]  ;;  %v1361_v7 = vld [vmem:[#allocation16 + $0x610] sm:$0xff] }
 0x3c7   :  { %1559 = vmatpush.msra.mxu3 %v1441_v22  ;;  %1576 = vmatpush.msrb.mxu1 %v1355_v4  ;;  %v1694_v63 = vld [vmem:[#allocation19 + $0x148] sm:$0xff]  ;;  %v1430_v4 = vld [vmem:[#allocation16 + $0x838] sm:$0xff] }
 0x3c8   :  { %1537 = vmatpush.msra.mxu0 %v1399_v10  ;;  %1522 = vmatpush.msra.mxu2 %v1336_v12  ;;  %v1414_v10 = vld [vmem:[#allocation16 + $0x7b8] sm:$0xff]  ;;  %v1411_v12 = vld [vmem:[#allocation16 + $0x7a0] sm:$0xff] }
 0x3c9   :  { %1560 = vmatpush.msra.mxu3 %v1438_v39  ;;  %1577 = vmatpush.msrb.mxu1 %v1352_v9  ;;  %v1427_v9 = vld [vmem:[#allocation16 + $0x820] sm:$0xff] }
 0x3ca   :  { %1538 = vmatpush.msra.mxu0 %v1396_v13  ;;  %1523 = vmatpush.msra.mxu2 %v1333_v14  ;;  %v1346_v13 = vld [vmem:[#allocation16 + $0x598] sm:$0xff]  ;;  %v1408_v14 = vld [vmem:[#allocation16 + $0x788] sm:$0xff] }
 0x3cb   :  { %1561 = vmatpush.msra.mxu3 %v1435_v43  ;;  %1578 = vmatpush.msrb.mxu1 %v1349_v11  ;;  %v1662_v11 = vld [vmem:[#allocation19 + $0x48] sm:$0xff] }
 0x3cc   :  { %1539 = vmatpush.msra.mxu0 %v1393_v50  ;;  %1524 = vmatpush.msra.mxu2 %v1330_v15  ;;  %v1343_v50 = vld [vmem:[#allocation16 + $0x580] sm:$0xff]  ;;  %v1340_v15 = vld [vmem:[#allocation16 + $0x568] sm:$0xff] }
 0x3cd   :  { %1562 = vmatpush.msra.mxu3 %v1432_v47  ;;  %1579 = vmatpush.msrb.mxu1 %v1346_v13  ;;  %v1448_v47 = vld [vmem:[#allocation16 + $0x8c8] sm:$0xff] }
 0x3ce   :  { %1540 = vmatpush.msra.mxu0 %v1390_v16  ;;  %1525 = vmatpush.msra.mxu2 %v1327_v18  ;;  %v1337_v16 = vld [vmem:[#allocation16 + $0x550] sm:$0xff]  ;;  %v1334_v18 = vld [vmem:[#allocation16 + $0x538] sm:$0xff] }
 0x3cf   :  { %1563 = vmatpush.msra.mxu3 %v1429_v52  ;;  %1580 = vmatpush.msrb.mxu1 %v1343_v50  ;;  %v1668_v52 = vld [vmem:[#allocation19 + $0x78] sm:$0xff] }
 0x3d0   :  { %1526 = vmatpush.msra.mxu2 %v1324_v19  ;;  %1541 = vmatpush.msra.mxu0 %v1387_v35  ;;  %v1331_v19 = vld [vmem:[#allocation16 + $0x520] sm:$0xff]  ;;  %v1316_v35 = vld [vmem:[#allocation16 + $0x4a8] sm:$0xff] }
 0x3d1   :  { %1564 = vmatpush.msra.mxu3 %v1426_v56  ;;  %1581 = vmatpush.msrb.mxu1 %v1340_v15  ;;  %v1696_v56 = vld [vmem:[#allocation19 + $0x158] sm:$0xff]  ;;  %v1661_v15 = vld [vmem:[#allocation19 + $0x40] sm:$0xff] }
 0x3d2   :  { %1527 = vmatpush.msra.mxu2 %v1321_v20  ;;  %1542 = vmatpush.msra.mxu0 %v1384_v38  ;;  %v1328_v20 = vld [vmem:[#allocation16 + $0x508] sm:$0xff] }
 0x3d3   :  { %1565 = vmatpush.msra.mxu3 %v1423_v60  ;;  %1582 = vmatpush.msrb.mxu1 %v1337_v16  ;;  %v1436_v60 = vld [vmem:[#allocation16 + $0x868] sm:$0xff] }
 0x3d4   :  { %1528 = vmatpush.msra.mxu2 %v1318_v21  ;;  %1543 = vmatpush.msra.mxu0 %v1381_v29  ;;  %v1690_v16 = vld [vmem:[#allocation19 + $0x128] sm:$0xff] }
 0x3d5   :  { %1566 = vmatpush.msra.mxu3 %v1420_v2  ;;  %1583 = vmatpush.msrb.mxu1 %v1334_v18  ;;  %v1664_v2 = vld [vmem:[#allocation19 + $0x58] sm:$0xff] }
 0x3d6   :  { %1529 = vmatpush.msra.mxu2 %v1315_v25  ;;  %1544 = vmatpush.msra.mxu0 %v1378_v42  ;;  %v1325_v25 = vld [vmem:[#allocation16 + $0x4f0] sm:$0xff]  ;;  %v1700_v42 = vld [vmem:[#allocation19 + $0x178] sm:$0xff] }
 0x3d7   :  { %1567 = vmatpush.msra.mxu3 %v1417_v6  ;;  %1584 = vmatpush.msrb.mxu1 %v1331_v19  ;;  %v1663_v6 = vld [vmem:[#allocation19 + $0x50] sm:$0xff] }
 0x3d8   :  { %1530 = vmatpush.msra.mxu2 %v1312_v26  ;;  %1545 = vmatpush.msra.mxu0 %v1375_v46 }
 0x3d9   :  { %1568 = vmatpush.msra.mxu3 %v1414_v10  ;;  %1585 = vmatpush.msrb.mxu1 %v1328_v20  ;;  %v1421_v20 = vld [vmem:[#allocation16 + $0x7f0] sm:$0xff] }
 0x3da   :  { %1595 = vmatpush.msrb.mxu2 %v1406_v27  ;;  %1546 = vmatpush.msra.mxu0 %v1372_v51  ;;  %v2900_v27 = vld [vmem:[#allocation18] sm:$0x7]  ;;  %v1445_v51 = vld [vmem:[#allocation16 + $0x8b0] sm:$0xff] }
 0x3db   :  { %1569 = vmatpush.msra.mxu3 %v1411_v12  ;;  %1586 = vmatpush.msrb.mxu1 %v1325_v25  ;;  %v1298_v34 = vperm.slane %v2900_v27, 0  ;;  %v1691_v12 = vld [vmem:[#allocation19 + $0x130] sm:$0xff]  ;;  %v1300_v19 = vperm.slane %v2900_v27, 2  ;;  %v1689_v25 = vld [vmem:[#allocation19 + $0x120] sm:$0xff] }
 0x3dc   :  { %1596 = vmatpush.msrb.mxu2 %v1403_v28  ;;  %1547 = vmatpush.msra.mxu0 %v1369_v55  ;;  %v1322_v28 = vld [vmem:[#allocation16 + $0x4d8] sm:$0xff] }
 0x3dd   :  { %1570 = vmatpush.msra.mxu3 %v1408_v14  ;;  %1587 = vmatpush.msrb.mxu1 %v1322_v28  ;;  %v1667_v55 = vld [vmem:[#allocation19 + $0x70] sm:$0xff]  ;;  %v1424_v14 = vld [vmem:[#allocation16 + $0x808] sm:$0xff] }
 0x3de   :  { %1597 = vmatpush.msrb.mxu2 %v1400_v30  ;;  %1548 = vmatpush.msra.mxu0 %v1366_v59  ;;  %v1695_v59 = vld [vmem:[#allocation19 + $0x150] sm:$0xff] }
 0x3df   :  { %v1418_v28 = vld [vmem:[#allocation16 + $0x7d8] sm:$0xff] }
 0x3e0   :  { %1598 = vmatpush.msrb.mxu2 %v1397_v31  ;;  %1549 = vmatpush.msra.mxu0 %v1363_v1  ;;  %v1433_v1 = vld [vmem:[#allocation16 + $0x850] sm:$0xff] }
 0x3e2   :  { %1599 = vmatpush.msrb.mxu2 %v1394_v32  ;;  %1550 = vmatpush.msra.mxu0 %v1360_v5  ;;  %v1319_v32 = vld [vmem:[#allocation16 + $0x4c0] sm:$0xff] }
 0x3e3   :  { %1588 = vmatpush.msrb.mxu1 %v1319_v32 }
 0x3e4   :  { %1600 = vmatpush.msrb.mxu2 %v1391_v33 }
 0x3e5   :  { %1589 = vmatpush.msrb.mxu1 %v1316_v35 }
 0x3e6   :  { %1601 = vmatpush.msrb.mxu2 %v1388_v37  ;;  %v1313_v37 = vld [vmem:[#allocation16 + $0x490] sm:$0xff] }
 0x3e7   :  { %1590 = vmatpush.msrb.mxu1 %v1313_v37  ;;  %v1412_v37 = vld [vmem:[#allocation16 + $0x7a8] sm:$0xff] }
 0x3e8   :  { %1602 = vmatpush.msrb.mxu2 %v1385_v23 }
 0x3ea   :  { %1603 = vmatpush.msrb.mxu2 %v1382_v40  ;;  %v1299_v40 = vperm.slane %v2900_v27, 1  ;;  %v1658_v27 = vld [vmem:[#allocation19 + $0x28] sm:$0xff] }
 0x3ec   :  { %1604 = vmatpush.msrb.mxu2 %v1379_v44  ;;  %v1451_v44 = vld [vmem:[#allocation16 + $0x8e0] sm:$0xff] }
 0x3ee   :  { %1605 = vmatpush.msrb.mxu2 %v1376_v48  ;;  %v1698_v48 = vld [vmem:[#allocation19 + $0x168] sm:$0xff] }
 0x3f0   :  { %1606 = vmatpush.msrb.mxu2 %v1373_v53  ;;  %v1697_v53 = vld [vmem:[#allocation19 + $0x160] sm:$0xff] }
 0x3f2   :  { %1607 = vmatpush.msrb.mxu2 %v1370_v57  ;;  %v1439_v57 = vld [vmem:[#allocation16 + $0x880] sm:$0xff] }
 0x3f4   :  { %1608 = vmatpush.msrb.mxu2 %v1367_v62  ;;  %v1665_v62 = vld [vmem:[#allocation19 + $0x60] sm:$0xff] }
 0x3f6   :  { %1609 = vmatpush.msrb.mxu2 %v1364_v3  ;;  %v1693_v3 = vld [vmem:[#allocation19 + $0x140] sm:$0xff] }
 0x3f8   :  { %1610 = vmatpush.msrb.mxu2 %v1361_v7  ;;  %v1692_v7 = vld [vmem:[#allocation19 + $0x138] sm:$0xff] }
 0x416   :  { %v1190_v17 = vpop.f32.mrf.mxu1 }
 0x41c   :  { %v1130_v21 = vpop.f32.mrf.mxu2 }
 0x41e   :  { %v1150_v26 = vpop.f32.mrf.mxu0  ;;  %v1170_v31 = vpop.f32.mrf.mxu3 }
 0x41f   :  { %v1151_v30 = vadd.f32 %v1150_v26, %v1130_v21  ;;  %v1270_v10 = vpop.f32.mrf.mxu1  ;;  %v1660_v21 = vld [vmem:[#allocation19 + $0x38] sm:$0xff] }
 0x421   :  { %v1171_v33 = vadd.f32 %v1170_v31, %v1151_v30  ;;  %v1659_v30 = vld [vmem:[#allocation19 + $0x30] sm:$0xff]  ;;  %v1688_v31 = vld [vmem:[#allocation19 + $0x118] sm:$0xff] }
 0x423   :  { %v1293_v36 = vmul.f32 %v1171_v33, %v2883_v61  ;;  %v1415_v33 = vld [vmem:[#allocation16 + $0x7c0] sm:$0xff] }
 0x424   :  { %v1210_v38 = vpop.f32.mrf.mxu2 }
 0x425   :  { %v1304_v22 = vadd.f32 %v1298_v34, %v1293_v36  ;;  %v1211_v23 = vadd.f32 %v1210_v38, %v1190_v17  ;;  %v1687_v34 = vld [vmem:[#allocation19 + $0x110] sm:$0xff]  ;;  %v1684_v36 = vld [vmem:[#allocation19 + $0xf8] sm:$0xff]  ;;  %v1657_v17 = vld [vmem:[#allocation19 + $0x20] sm:$0xff] }
 0x426   :  { %v1230_v24 = vpop.f32.mrf.mxu0  ;;  %v1250_v5 = vpop.f32.mrf.mxu3  ;;  %v1686_v38 = vld [vmem:[#allocation19 + $0x108] sm:$0xff] }
 0x427   :  { %v2905_v29 = vadd.f32 %v1304_v22, %v2883_v61  ;;  %v1231_v39 = vadd.f32 %v1230_v24, %v1211_v23  ;;  %v1271_v13 = vadd.f32 %v1270_v10, %v1250_v5  ;;  %v1683_v22 = vld [vmem:[#allocation19 + $0xf0] sm:$0xff]  ;;  %v1656_v24 = vld [vmem:[#allocation19 + $0x18] sm:$0xff]  ;;  %v1778_v10 = vld [vmem:[#allocation22 + $0x60] sm:$0xff] }
 0x428   :  { %v1409_v23 = vld [vmem:[#allocation16 + $0x790] sm:$0xff]  ;;  %v1837_v5 = vld [vmem:[#allocation25 + $0xf0] sm:$0xff] }
 0x429   :  { %v1294_v43 = vmul.f32 %v1231_v39, %v2892_v8  ;;  %1471 = vmatmul.f32.vlgmr.msrb.gmra.mxu0 %v2905_v29  ;;  %1531 = vmatmul.f32.vlgmr.msra.gmra.mxu2 %v2905_v29  ;;  %v1685_v39 = vld [vmem:[#allocation19 + $0x100] sm:$0xff] }
 0x42a   :  { %1615 = vmatpush.msrb.mxu0 %v1454_v41  ;;  %1745 = vmatpush.msra.mxu2 %v1700_v42  ;;  %v1655_v41 = vld [vmem:[#allocation19 + $0x10] sm:$0xff]  ;;  %v1681_v42 = vld [vmem:[#allocation19 + $0xe0] sm:$0xff] }
 0x42b   :  { %v1305_v46 = vadd.f32 %v1299_v40, %v1294_v43  ;;  %v1682_v40 = vld [vmem:[#allocation19 + $0xe8] sm:$0xff] }
 0x42c   :  { %1616 = vmatpush.msrb.mxu0 %v1451_v44  ;;  %1746 = vmatpush.msra.mxu2 %v1699_v45  ;;  %v1654_v43 = vld [vmem:[#allocation19 + $0x8] sm:$0xff]  ;;  %v1680_v44 = vld [vmem:[#allocation19 + $0xd8] sm:$0xff]  ;;  %v1653_v45 = vld [vmem:[#allocation19] sm:$0xff] }
 0x42d   :  { %v2912_v49 = vadd.f32 %v1305_v46, %v2892_v8  ;;  %v1679_v46 = vld [vmem:[#allocation19 + $0xd0] sm:$0xff] }
 0x42e   :  { %1617 = vmatpush.msrb.mxu0 %v1448_v47  ;;  %1747 = vmatpush.msra.mxu2 %v1698_v48  ;;  %v1678_v47 = vld [vmem:[#allocation19 + $0xc8] sm:$0xff]  ;;  %v1677_v48 = vld [vmem:[#allocation19 + $0xc0] sm:$0xff] }
 0x42f   :  { %1491 = vmatmul.f32.vlgmr.msrb.gmra.mxu3 %v2912_v49 }
 0x430   :  { %1618 = vmatpush.msrb.mxu0 %v1445_v51  ;;  %1705 = vmatpush.msrb.mxu3 %v1668_v52  ;;  %v1676_v51 = vld [vmem:[#allocation19 + $0xb8] sm:$0xff]  ;;  %v1675_v52 = vld [vmem:[#allocation19 + $0xb0] sm:$0xff] }
 0x431   :  { %1748 = vmatpush.msra.mxu2 %v1697_v53  ;;  %1551 = vmatmul.f32.vlgmr.msra.gmra.mxu0 %v2912_v49  ;;  %v1674_v53 = vld [vmem:[#allocation19 + $0xa8] sm:$0xff] }
 0x432   :  { %1611 = vmatmul.f32.vlgmr.msrb.gmra.mxu2 %v2912_v49  ;;  %1619 = vmatpush.msrb.mxu0 %v1442_v54  ;;  %v1673_v54 = vld [vmem:[#allocation19 + $0xa0] sm:$0xff] }
 0x433   :  { %1706 = vmatpush.msrb.mxu3 %v1667_v55  ;;  %1749 = vmatpush.msra.mxu2 %v1696_v56  ;;  %v1672_v55 = vld [vmem:[#allocation19 + $0x98] sm:$0xff]  ;;  %v1671_v56 = vld [vmem:[#allocation19 + $0x90] sm:$0xff] }
 0x434   :  { %1620 = vmatpush.msrb.mxu0 %v1439_v57  ;;  %v1670_v57 = vld [vmem:[#allocation19 + $0x88] sm:$0xff] }
 0x435   :  { %1707 = vmatpush.msrb.mxu3 %v1666_v58  ;;  %1750 = vmatpush.msra.mxu2 %v1695_v59  ;;  %v1669_v58 = vld [vmem:[#allocation19 + $0x80] sm:$0xff] }
 0x436   :  { %1621 = vmatpush.msrb.mxu0 %v1436_v60  ;;  %v1822_v59 = vld [vmem:[#allocation25 + $0x78] sm:$0xff]  ;;  %v1821_v60 = vld [vmem:[#allocation25 + $0x70] sm:$0xff] }
 0x437   :  { %1708 = vmatpush.msrb.mxu3 %v1665_v62  ;;  %1751 = vmatpush.msra.mxu2 %v1694_v63  ;;  %v1820_v62 = vld [vmem:[#allocation25 + $0x68] sm:$0xff]  ;;  %v1781_v63 = vld [vmem:[#allocation22 + $0x78] sm:$0xff] }
 0x438   :  { %1622 = vmatpush.msrb.mxu0 %v1433_v1  ;;  %v1819_v1 = vld [vmem:[#allocation25 + $0x60] sm:$0xff] }
 0x439   :  { %1709 = vmatpush.msrb.mxu3 %v1664_v2  ;;  %1752 = vmatpush.msra.mxu2 %v1693_v3  ;;  %v1838_v2 = vld [vmem:[#allocation25 + $0xf8] sm:$0xff]  ;;  %v1780_v3 = vld [vmem:[#allocation22 + $0x70] sm:$0xff] }
 0x43a   :  { %1623 = vmatpush.msrb.mxu0 %v1430_v4  ;;  %v1818_v4 = vld [vmem:[#allocation25 + $0x58] sm:$0xff] }
 0x43b   :  { %1710 = vmatpush.msrb.mxu3 %v1663_v6  ;;  %1753 = vmatpush.msra.mxu2 %v1692_v7  ;;  %v1779_v6 = vld [vmem:[#allocation22 + $0x68] sm:$0xff]  ;;  %v1817_v7 = vld [vmem:[#allocation25 + $0x50] sm:$0xff] }
 0x43c   :  { %v1290_v50 = vpop.f32.mrf.mxu2  ;;  %1624 = vmatpush.msrb.mxu0 %v1427_v9  ;;  %v1836_v9 = vld [vmem:[#allocation25 + $0xe8] sm:$0xff] }
 0x43d   :  { %v1291_v18 = vadd.f32 %v1290_v50, %v1271_v13  ;;  %1711 = vmatpush.msrb.mxu3 %v1662_v11  ;;  %1754 = vmatpush.msra.mxu2 %v1691_v12  ;;  %v1816_v11 = vld [vmem:[#allocation25 + $0x48] sm:$0xff]  ;;  %v1835_v12 = vld [vmem:[#allocation25 + $0xe0] sm:$0xff]  ;;  %v1777_v13 = vld [vmem:[#allocation22 + $0x58] sm:$0xff] }
 0x43e   :  { %1625 = vmatpush.msrb.mxu0 %v1424_v14  ;;  %v1815_v14 = vld [vmem:[#allocation25 + $0x40] sm:$0xff]  ;;  %v1834_v50 = vld [vmem:[#allocation25 + $0xd8] sm:$0xff] }
 0x43f   :  { %v1295_v26 = vmul.f32 %v1291_v18, %v2886_v0  ;;  %1712 = vmatpush.msrb.mxu3 %v1661_v15  ;;  %1755 = vmatpush.msra.mxu2 %v1690_v16  ;;  %v1776_v15 = vld [vmem:[#allocation22 + $0x50] sm:$0xff]  ;;  %v1814_v16 = vld [vmem:[#allocation25 + $0x38] sm:$0xff] }
 0x440   :  { %1626 = vmatpush.msrb.mxu0 %v1421_v20  ;;  %v1833_v18 = vld [vmem:[#allocation25 + $0xd0] sm:$0xff] }
 0x441   :  { %v1306_v32 = vadd.f32 %v1300_v19, %v1295_v26  ;;  %1713 = vmatpush.msrb.mxu3 %v1660_v21  ;;  %1756 = vmatpush.msra.mxu2 %v1689_v25  ;;  %v1775_v19 = vld [vmem:[#allocation22 + $0x48] sm:$0xff]  ;;  %v1813_v20 = vld [vmem:[#allocation25 + $0x30] sm:$0xff]  ;;  %v1774_v25 = vld [vmem:[#allocation22 + $0x40] sm:$0xff] }
 0x442   :  { %1627 = vmatpush.msrb.mxu0 %v1418_v28  ;;  %v1832_v21 = vld [vmem:[#allocation25 + $0xc8] sm:$0xff]  ;;  %v1831_v28 = vld [vmem:[#allocation25 + $0xc0] sm:$0xff] }
 0x443   :  { %v2920_v35 = vadd.f32 %v1306_v32, %v2886_v0  ;;  %1714 = vmatpush.msrb.mxu3 %v1659_v30  ;;  %1757 = vmatpush.msra.mxu2 %v1688_v31  ;;  %v1812_v26 = vld [vmem:[#allocation25 + $0x28] sm:$0xff]  ;;  %v1773_v30 = vld [vmem:[#allocation22 + $0x38] sm:$0xff]  ;;  %v1811_v31 = vld [vmem:[#allocation25 + $0x20] sm:$0xff] }
 0x444   :  { %1628 = vmatpush.msrb.mxu0 %v1415_v33  ;;  %v1830_v32 = vld [vmem:[#allocation25 + $0xb8] sm:$0xff]  ;;  %v1772_v33 = vld [vmem:[#allocation22 + $0x30] sm:$0xff] }
 0x445   :  { %1715 = vmatpush.msrb.mxu3 %v1658_v27  ;;  %1758 = vmatpush.msra.mxu2 %v1687_v34  ;;  %v1810_v27 = vld [vmem:[#allocation25 + $0x18] sm:$0xff]  ;;  %v1829_v34 = vld [vmem:[#allocation25 + $0xb0] sm:$0xff] }
 0x446   :  { %1511 = vmatmul.f32.vlgmr.msra.gmra.mxu1 %v2920_v35  ;;  %1571 = vmatmul.f32.vlgmr.msra.gmra.mxu3 %v2920_v35 }
 0x447   :  { %1725 = vmatpush.msra.mxu1 %v1684_v36  ;;  %1629 = vmatpush.msrb.mxu0 %v1412_v37  ;;  %v1771_v36 = vld [vmem:[#allocation22 + $0x28] sm:$0xff]  ;;  %v1809_v37 = vld [vmem:[#allocation25 + $0x10] sm:$0xff] }
 0x448   :  { %1716 = vmatpush.msrb.mxu3 %v1657_v17  ;;  %1759 = vmatpush.msra.mxu2 %v1686_v38  ;;  %v1828_v17 = vld [vmem:[#allocation25 + $0xa8] sm:$0xff]  ;;  %v1770_v38 = vld [vmem:[#allocation22 + $0x20] sm:$0xff] }
 0x449   :  { %1726 = vmatpush.msra.mxu1 %v1683_v22  ;;  %1630 = vmatpush.msrb.mxu0 %v1409_v23  ;;  %v1808_v22 = vld [vmem:[#allocation25 + $0x8] sm:$0xff]  ;;  %v1827_v23 = vld [vmem:[#allocation25 + $0xa0] sm:$0xff] }
 0x44a   :  { %1717 = vmatpush.msrb.mxu3 %v1656_v24  ;;  %1760 = vmatpush.msra.mxu2 %v1685_v39  ;;  %v1769_v24 = vld [vmem:[#allocation22 + $0x18] sm:$0xff]  ;;  %v1807_v39 = vld [vmem:[#allocation25] sm:$0xff] }
 0x44b   :  { %1631 = vmatmul.f32.vlgmr.msrb.gmra.mxu0 %v2920_v35  ;;  %1727 = vmatpush.msra.mxu1 %v1682_v40  ;;  %v1826_v40 = vld [vmem:[#allocation25 + $0x98] sm:$0xff] }
 0x44c   :  { %1761 = vmatmul.f32.vlgmr.msra.gmra.mxu2 %v2886_v0  ;;  %1718 = vmatpush.msrb.mxu3 %v1655_v41  ;;  %v1768_v41 = vld [vmem:[#allocation22 + $0x10] sm:$0xff] }
 0x44d   :  { %1728 = vmatpush.msra.mxu1 %v1681_v42  ;;  %1786 = vmatpush.msra.mxu0 %v1781_v63  ;;  %v1825_v42 = vld [vmem:[#allocation25 + $0x90] sm:$0xff]  ;;  %v1846_v63 = vld [vmem:[#allocation25 + $0x138] sm:$0xff] }
 0x44e   :  { %1719 = vmatpush.msrb.mxu3 %v1654_v43  ;;  %1591 = vmatmul.f32.vlgmr.msrb.gmra.mxu1 %v2905_v29  ;;  %v1767_v43 = vld [vmem:[#allocation22 + $0x8] sm:$0xff] }
 0x44f   :  { %1729 = vmatpush.msra.mxu1 %v1680_v44  ;;  %1911 = vmatpush.msrb.mxu2 %v1838_v2  ;;  %v1824_v44 = vld [vmem:[#allocation25 + $0x88] sm:$0xff] }
 0x450   :  { %1720 = vmatpush.msrb.mxu3 %v1653_v45  ;;  %1787 = vmatpush.msra.mxu0 %v1780_v3  ;;  %v1766_v45 = vld [vmem:[#allocation22] sm:$0xff] }
 0x451   :  { %1721 = vmatmul.f32.vlgmr.msrb.gmra.mxu3 %v2883_v61  ;;  %1730 = vmatpush.msra.mxu1 %v1679_v46  ;;  %v1823_v46 = vld [vmem:[#allocation25 + $0x80] sm:$0xff] }
 0x452   :  { %1912 = vmatpush.msrb.mxu2 %v1837_v5  ;;  %1788 = vmatpush.msra.mxu0 %v1779_v6 }
 0x453   :  { %1731 = vmatpush.msra.mxu1 %v1678_v47  ;;  %v1854_v47 = vld [vmem:[#allocation25 + $0x178] sm:$0xff] }
 0x454   :  { %1913 = vmatpush.msrb.mxu2 %v1836_v9  ;;  %1789 = vmatpush.msra.mxu0 %v1778_v10 }
 0x455   :  { %1732 = vmatpush.msra.mxu1 %v1677_v48  ;;  %v1853_v48 = vld [vmem:[#allocation25 + $0x170] sm:$0xff] }
 0x456   :  { %1914 = vmatpush.msrb.mxu2 %v1835_v12  ;;  %1790 = vmatpush.msra.mxu0 %v1777_v13 }
 0x457   :  { %1733 = vmatpush.msra.mxu1 %v1676_v51  ;;  %v1852_v51 = vld [vmem:[#allocation25 + $0x168] sm:$0xff] }
 0x458   :  { %1915 = vmatpush.msrb.mxu2 %v1834_v50  ;;  %1791 = vmatpush.msra.mxu0 %v1776_v15  ;;  %v1842_v15 = vld [vmem:[#allocation25 + $0x118] sm:$0xff] }
 0x459   :  { %1734 = vmatpush.msra.mxu1 %v1675_v52  ;;  %v1851_v52 = vld [vmem:[#allocation25 + $0x160] sm:$0xff] }
 0x45a   :  { %1916 = vmatpush.msrb.mxu2 %v1833_v18  ;;  %1792 = vmatpush.msra.mxu0 %v1775_v19 }
 0x45b   :  { %1735 = vmatpush.msra.mxu1 %v1674_v53  ;;  %v1850_v53 = vld [vmem:[#allocation25 + $0x158] sm:$0xff] }
 0x45c   :  { %1917 = vmatpush.msrb.mxu2 %v1832_v21  ;;  %1793 = vmatpush.msra.mxu0 %v1774_v25 }
 0x45d   :  { %1736 = vmatpush.msra.mxu1 %v1673_v54 }
 0x45e   :  { %1918 = vmatpush.msrb.mxu2 %v1831_v28  ;;  %1794 = vmatpush.msra.mxu0 %v1773_v30 }
 0x45f   :  { %1737 = vmatpush.msra.mxu1 %v1672_v55  ;;  %v1849_v55 = vld [vmem:[#allocation25 + $0x150] sm:$0xff] }
 0x460   :  { %1919 = vmatpush.msrb.mxu2 %v1830_v32  ;;  %1795 = vmatpush.msra.mxu0 %v1772_v33 }
 0x461   :  { %1738 = vmatpush.msra.mxu1 %v1671_v56  ;;  %v1848_v56 = vld [vmem:[#allocation25 + $0x148] sm:$0xff] }
 0x462   :  { %1920 = vmatpush.msrb.mxu2 %v1829_v34  ;;  %1796 = vmatpush.msra.mxu0 %v1771_v36 }
 0x463   :  { %1739 = vmatpush.msra.mxu1 %v1670_v57 }
 0x464   :  { %1921 = vmatpush.msrb.mxu2 %v1828_v17  ;;  %1797 = vmatpush.msra.mxu0 %v1770_v38 }
 0x465   :  { %1740 = vmatpush.msra.mxu1 %v1669_v58  ;;  %v1847_v58 = vld [vmem:[#allocation25 + $0x140] sm:$0xff] }
 0x466   :  { %1741 = vmatmul.f32.vlgmr.msra.gmra.mxu1 %v2892_v8  ;;  %1922 = vmatpush.msrb.mxu2 %v1827_v23  ;;  %v1870_v23 = vld [vmem:[#allocation27 + $0x78] sm:$0xff] }
 0x467   :  { %1891 = vmatpush.msrb.mxu1 %v1822_v59  ;;  %1798 = vmatpush.msra.mxu0 %v1769_v24  ;;  %v1639_v59 = vld [vmem:[#allocation18 + $0x3] sm:$0x7]  ;;  %v1869_v24 = vld [vmem:[#allocation27 + $0x70] sm:$0xff] }
 0x468   :  { %1923 = vmatpush.msrb.mxu2 %v1826_v40  ;;  %v1641_v2 = vperm.slane %v1639_v59, 0  ;;  %v1642_v50 = vperm.slane %v1639_v59, 1  ;;  %v1643_v17 = vperm.slane %v1639_v59, 2  ;;  %1871 = vmatpush.msra.mxu3 %v1870_v23  ;;  %v1867_v40 = vld [vmem:[#allocation27 + $0x60] sm:$0xff] }
 0x469   :  { %1892 = vmatpush.msrb.mxu1 %v1821_v60  ;;  %1799 = vmatpush.msra.mxu0 %v1768_v41  ;;  %v1866_v41 = vld [vmem:[#allocation27 + $0x58] sm:$0xff] }
 0x46a   :  { %1924 = vmatpush.msrb.mxu2 %v1825_v42  ;;  %1872 = vmatpush.msra.mxu3 %v1869_v24  ;;  %v1865_v42 = vld [vmem:[#allocation27 + $0x50] sm:$0xff] }
 0x46b   :  { %1893 = vmatpush.msrb.mxu1 %v1820_v62  ;;  %1800 = vmatpush.msra.mxu0 %v1767_v43  ;;  %v1864_v43 = vld [vmem:[#allocation27 + $0x48] sm:$0xff] }
 0x46c   :  { %1925 = vmatpush.msrb.mxu2 %v1824_v44  ;;  %v1862_v44 = vld [vmem:[#allocation27 + $0x38] sm:$0xff] }
 0x46d   :  { %1894 = vmatpush.msrb.mxu1 %v1819_v1  ;;  %1801 = vmatpush.msra.mxu0 %v1766_v45  ;;  %v1861_v45 = vld [vmem:[#allocation27 + $0x30] sm:$0xff] }
 0x46e   :  { %1926 = vmatpush.msrb.mxu2 %v1823_v46  ;;  %v1859_v46 = vld [vmem:[#allocation27 + $0x20] sm:$0xff] }
 0x46f   :  { %1895 = vmatpush.msrb.mxu1 %v1818_v4  ;;  %1931 = vmatpush.msrb.mxu0 %v1854_v47  ;;  %v1845_v4 = vld [vmem:[#allocation25 + $0x130] sm:$0xff]  ;;  %v1858_v47 = vld [vmem:[#allocation27 + $0x18] sm:$0xff] }
 0x471   :  { %1896 = vmatpush.msrb.mxu1 %v1817_v7  ;;  %1932 = vmatpush.msrb.mxu0 %v1853_v48  ;;  %v1844_v7 = vld [vmem:[#allocation25 + $0x128] sm:$0xff]  ;;  %v1857_v48 = vld [vmem:[#allocation27 + $0x10] sm:$0xff] }
 0x473   :  { %1897 = vmatpush.msrb.mxu1 %v1816_v11  ;;  %1933 = vmatpush.msrb.mxu0 %v1852_v51  ;;  %v1843_v11 = vld [vmem:[#allocation25 + $0x120] sm:$0xff]  ;;  %v1856_v51 = vld [vmem:[#allocation27 + $0x8] sm:$0xff] }
 0x475   :  { %1898 = vmatpush.msrb.mxu1 %v1815_v14  ;;  %1934 = vmatpush.msrb.mxu0 %v1851_v52  ;;  %v1855_v52 = vld [vmem:[#allocation27] sm:$0xff] }
 0x477   :  { %1899 = vmatpush.msrb.mxu1 %v1814_v16  ;;  %1935 = vmatpush.msrb.mxu0 %v1850_v53  ;;  %v1841_v16 = vld [vmem:[#allocation25 + $0x110] sm:$0xff]  ;;  %v2045_v53 = vld [vmem:[#allocation24] ss:$0 sm:$0xff] }
 0x479   :  { %1900 = vmatpush.msrb.mxu1 %v1813_v20  ;;  %1936 = vmatpush.msrb.mxu0 %v1849_v55  ;;  %v1839_v20 = vld [vmem:[#allocation25 + $0x100] sm:$0xff] }
 0x47b   :  { %1901 = vmatpush.msrb.mxu1 %v1812_v26  ;;  %1937 = vmatpush.msrb.mxu0 %v1848_v56  ;;  %v2044_v26 = vld [vmem:[#allocation21] ss:$0 sm:$0xff] }
 0x47d   :  { %1902 = vmatpush.msrb.mxu1 %v1811_v31  ;;  %1938 = vmatpush.msrb.mxu0 %v1847_v58 }
 0x47f   :  { %1903 = vmatpush.msrb.mxu1 %v1810_v27  ;;  %1939 = vmatpush.msrb.mxu0 %v1846_v63 }
 0x481   :  { %1904 = vmatpush.msrb.mxu1 %v1809_v37  ;;  %1940 = vmatpush.msrb.mxu0 %v1845_v4 }
 0x483   :  { %1905 = vmatpush.msrb.mxu1 %v1808_v22  ;;  %1941 = vmatpush.msrb.mxu0 %v1844_v7 }
 0x485   :  { %1906 = vmatpush.msrb.mxu1 %v1807_v39  ;;  %1942 = vmatpush.msrb.mxu0 %v1843_v11  ;;  %v1868_v39 = vld [vmem:[#allocation27 + $0x68] sm:$0xff] }
 0x486   :  { %1873 = vmatpush.msra.mxu3 %v1868_v39 }
 0x487   :  { %1943 = vmatpush.msrb.mxu0 %v1842_v15 }
 0x488   :  { %1874 = vmatpush.msra.mxu3 %v1867_v40 }
 0x489   :  { %1944 = vmatpush.msrb.mxu0 %v1841_v16 }
 0x48a   :  { %1875 = vmatpush.msra.mxu3 %v1866_v41 }
 0x48c   :  { %1876 = vmatpush.msra.mxu3 %v1865_v42 }
 0x48e   :  { %1877 = vmatpush.msra.mxu3 %v1864_v43 }
 0x4a6   :  { %v1472_v54 = vpop.f32.mrf.mxu0 }
 0x4ac   :  { %v1532_v6 = vpop.f32.mrf.mxu2 }
 0x4ae   :  { %v1552_v3 = vpop.f32.mrf.mxu0 }
 0x4af   :  { %v1553_v9 = vadd.f32 %v1552_v3, %v1532_v6 }
 0x4b2   :  { %v1492_v57 = vpop.f32.mrf.mxu3 }
 0x4b3   :  { %v1493_v60 = vadd.f32 %v1492_v57, %v1472_v54 }
 0x4c3   :  { %v1512_v62 = vpop.f32.mrf.mxu1 }
 0x4c4   :  { %v1513_v1 = vadd.f32 %v1512_v62, %v1493_v60 }
 0x4c6   :  { %v1635_v5 = vmul.f32 %v1513_v1, %v2883_v61  ;;  %v1840_v61 = vld [vmem:[#allocation25 + $0x108] sm:$0xff] }
 0x4c7   :  { %1945 = vmatpush.msrb.mxu0 %v1840_v61 }
 0x4c8   :  { %v1647_v10 = vadd.f32 %v1641_v2, %v1635_v5  ;;  %v1632_v32 = vpop.f32.mrf.mxu0 }
 0x4c9   :  { %v1572_v12 = vpop.f32.mrf.mxu3  ;;  %1946 = vmatpush.msrb.mxu0 %v1839_v20 }
 0x4ca   :  { %v1650_v13 = vadd.f32 %v1647_v10, %v2905_v29  ;;  %v1573_v14 = vadd.f32 %v1572_v12, %v1553_v9  ;;  %v1612_v29 = vpop.f32.mrf.mxu2 }
 0x4cb   :  { %v1592_v25 = vpop.f32.mrf.mxu1 }
 0x4cc   :  { %v1636_v18 = vmul.f32 %v1573_v14, %v2892_v8  ;;  %1907 = vmatmul.f32.vlgmr.msrb.gmra.mxu1 %v1650_v13  ;;  %v1613_v30 = vadd.f32 %v1612_v29, %v1592_v25 }
 0x4ce   :  { %v1648_v19 = vadd.f32 %v1642_v50, %v1636_v18  ;;  %v1633_v8 = vadd.f32 %v1632_v32, %v1613_v30 }
 0x4d0   :  { %v1651_v21 = vadd.f32 %v1648_v19, %v2912_v49  ;;  %v1637_v37 = vmul.f32 %v1633_v8, %v2886_v0  ;;  %v1863_v0 = vld [vmem:[#allocation27 + $0x40] sm:$0xff] }
 0x4d1   :  { %1878 = vmatpush.msra.mxu3 %v1863_v0 }
 0x4d2   :  { %1927 = vmatmul.f32.vlgmr.msrb.gmra.mxu2 %v1651_v21  ;;  %v1762_v34 = vpop.f32.mrf.mxu2  ;;  %v1649_v49 = vadd.f32 %v1643_v17, %v1637_v37 }
 0x4d3   :  { %1879 = vmatpush.msra.mxu3 %v1862_v44 }
 0x4d4   :  { %v1722_v28 = vpop.f32.mrf.mxu3  ;;  %v1652_v22 = vadd.f32 %v1649_v49, %v2920_v35  ;;  %v1860_v35 = vld [vmem:[#allocation27 + $0x28] sm:$0xff] }
 0x4d5   :  { %v1723_v31 = vadd.f32 %v2044_v26, %v1722_v28  ;;  %1880 = vmatpush.msra.mxu3 %v1861_v45 }
 0x4d7   :  { %1881 = vmatpush.msra.mxu3 %v1860_v35 }
 0x4d9   :  { %1882 = vmatpush.msra.mxu3 %v1859_v46 }
 0x4db   :  { %1883 = vmatpush.msra.mxu3 %v1858_v47 }
 0x4dd   :  { %1884 = vmatpush.msra.mxu3 %v1857_v48 }
 0x4df   :  { %1885 = vmatpush.msra.mxu3 %v1856_v51 }
 0x4e1   :  { %1886 = vmatpush.msra.mxu3 %v1855_v52 }
 0x4e3   :  { %v1742_v33 = vpop.f32.mrf.mxu1 }
 0x4e4   :  { %v1743_v27 = vadd.f32 %v1742_v33, %v1723_v31 }
 0x4e6   :  { %v1763_v36 = vadd.f32 %v1762_v34, %v1743_v27 }
 0x4e8   :  { %v1765_v38 = vmax.f32 %v1763_v36, 0.0 }
 0x4ea   :  { %1802 = vmatmul.f32.vlgmr.msra.gmra.mxu0 %v1765_v38 }
 0x4f2   :  { %1947 = vmatmul.f32.vlgmr.msrb.gmra.mxu0 %v1652_v22 }
 0x549   :  { %v1908_v57 = vpop.f32.mrf.mxu1 }
 0x555   :  { %v1928_v60 = vpop.f32.mrf.mxu2 }
 0x567   :  { %v1803_v54 = vpop.f32.mrf.mxu0 }
 0x568   :  { %v1804_v55 = vadd.f32 %v2045_v53, %v1803_v54 }
 0x56a   :  { %v1806_v56 = vmax.f32 %v1804_v55, 0.0 }
 0x56c   :  { %1887 = vmatmul.f32.vlgmr.msra.gmra.mxu3 %v1806_v56 }
 0x56f   :  { %v1948_v63 = vpop.f32.mrf.mxu0 }
 0x5ef   :  { %v1888_v58 = vpop.f32.mrf.mxu3 }
 0x5f0   :  { %v1909_v59 = vadd.f32 %v1908_v57, %v1888_v58 }
 0x5f2   :  { %v1929_v62 = vadd.f32 %v1928_v60, %v1909_v59 }
 0x5f4   :  { %v1949_v1 = vadd.f32 %v1948_v63, %v1929_v62 }
 0x5f6   :  { %1951 = vst [vmem:[%s2956_s18] sm:$0xff] %v1949_v1 }
 0x5f7   :  { %1956 = vsyncpa [#allocation3], 1 }
 0x5f8   :  { %1957 = vsyncpa [#allocation5], 1 }
 0x5f9   :  { %1958 = vsyncpa [#allocation8], 1 }
 0x5fa   :  { %1959 = vsyncpa [#allocation11], 1 }
 0x5fb   :  { %1960 = vsyncpa [#allocation14], 1 }
 0x5fc   :  { %1961 = vsyncpa [#allocation17], 1 }
 0x5fd   :  { %1962 = vsyncpa [#allocation20], 1 }
 0x5fe   :  { %1963 = vsyncpa [#allocation23], 1 }
 0x5ff   :  { %1964 = vsyncpa [#allocation26], 1 }

</bundles_post_ra>
